<compile_context>
chip_gen: v6e
topology: v6e:2x2x1
jax: 0.10.0
libtpu: 0.0.40
codegen_flags: <defaults>
</compile_context>

<pallas_src>
import functools

import jax
import jax.numpy as jnp
from jax.experimental import pallas as pl
from jax.experimental.pallas import tpu as pltpu


def _round_up(x, m):
    return (x + m - 1) // m * m


def _grpo_loss_kernel(lp_ref, old_ref, ref_ref, mask_ref, adv_ref,
                      rowloss_ref, rowklsum_ref,
                      num_acc, den_acc, kl_acc,
                      *, clip_eps_low, clip_eps_high, kl_weight,
                      policy_ops, max_resp_len):
    k = pl.program_id(1)

    @pl.when(k == 0)
    def _init():
        num_acc[...] = jnp.zeros_like(num_acc)
        den_acc[...] = jnp.zeros_like(den_acc)
        kl_acc[...] = jnp.zeros_like(kl_acc)

    lp = lp_ref[...].astype(jnp.float32)          # (TB, TT)
    old = old_ref[...].astype(jnp.float32)        # (TB, TT)
    mask = mask_ref[...].astype(jnp.float32)      # (TB, TT)  int8 -> f32
    adv = adv_ref[...].astype(jnp.float32)        # (TB, 1)   broadcast over lanes

    # approx_kl_divergence (k3 estimator) with masked logr; 'dapo' skips KL.
    if policy_ops == "dapo":
        kl = jnp.zeros_like(lp)
    else:
        logr = (ref_ref[...].astype(jnp.float32) - lp) * mask
        kl = jnp.exp(logr) - 1.0 - logr

    # PPO-style clipped surrogate.
    ratio = jnp.exp(lp - old)
    surr1 = ratio * adv
    surr2 = jnp.clip(ratio, 1.0 - clip_eps_low, 1.0 + clip_eps_high) * adv
    loss_tok = -jnp.minimum(surr1, surr2) + kl_weight * kl

    num_acc[...] += jnp.sum(loss_tok * mask, axis=-1, keepdims=True)
    den_acc[...] += jnp.sum(mask, axis=-1, keepdims=True)
    kl_acc[...] += jnp.sum(kl, axis=-1, keepdims=True)

    @pl.when(k == pl.num_programs(1) - 1)
    def _finalize():
        if policy_ops == "dr.grpo":
            rowloss_ref[...] = num_acc[...] * (1.0 / float(max_resp_len))
        else:  # 'grpo' and 'dapo' divide by per-row mask sum
            rowloss_ref[...] = num_acc[...] / den_acc[...]
        rowklsum_ref[...] = kl_acc[...]


def grpo_loss(log_probs, old_log_probs, log_probs_ref, action_mask, advantages,
              *, clip_eps_low=0.2, clip_eps_high=0.2, kl_weight=0.01,
              policy_ops="grpo", max_resp_len=1024):
    """Returns (loss, kl_mean) matching GRPOLoss.forward semantics."""
    assert policy_ops in ("grpo", "dr.grpo", "dapo")
    B, T = log_probs.shape

    # --- tiling -------------------------------------------------------------
    TB = 32                                  # satisfies int8/bf16/f32 sublane tiling
    T_aligned = _round_up(T, 128)
    TT = min(T_aligned, 1024)                # lane-dense tile for HBM bandwidth
    T_pad = _round_up(T_aligned, TT)
    B_pad = _round_up(B, TB)
    nb, nt = B_pad // TB, T_pad // TT

    # --- cheap input prep: no [B,T] advantage broadcast, mask at 1 B/token ---
    mask_i8 = action_mask.astype(jnp.int8)
    adv_col = advantages.astype(jnp.float32).reshape(B, -1)
    assert adv_col.shape[1] == 1, "advantages must be per-sequence: (B,) or (B,1)"

    def _pad2(x, rows, cols):
        if x.shape[0] == rows and x.shape[1] == cols:
            return x
        return jnp.pad(x, ((0, rows - x.shape[0]), (0, cols - x.shape[1])))

    lp = _pad2(log_probs, B_pad, T_pad)
    old = _pad2(old_log_probs, B_pad, T_pad)
    lref = _pad2(log_probs_ref, B_pad, T_pad)
    mask = _pad2(mask_i8, B_pad, T_pad)
    adv = _pad2(adv_col, B_pad, 1)

    kernel = functools.partial(
        _grpo_loss_kernel,
        clip_eps_low=float(clip_eps_low),
        clip_eps_high=float(clip_eps_high),
        kl_weight=float(kl_weight),
        policy_ops=policy_ops,
        max_resp_len=int(max_resp_len),
    )

    tile_spec = pl.BlockSpec((TB, TT), lambda i, k: (i, k))
    col_spec = pl.BlockSpec((TB, 1), lambda i, k: (i, 0))

    bytes_accessed = (lp.size * lp.dtype.itemsize
                      + old.size * old.dtype.itemsize
                      + lref.size * lref.dtype.itemsize
                      + mask.size * mask.dtype.itemsize
                      + adv.size * 4 + 2 * B_pad * 4)
    cost = pl.CostEstimate(flops=12 * B_pad * T_pad,
                           transcendentals=2 * B_pad * T_pad,
                           bytes_accessed=bytes_accessed)

    rowloss, rowklsum = pl.pallas_call(
        kernel,
        out_shape=(jax.ShapeDtypeStruct((B_pad, 1), jnp.float32),
                   jax.ShapeDtypeStruct((B_pad, 1), jnp.float32)),
        grid_spec=pltpu.PrefetchScalarGridSpec(
            num_scalar_prefetch=0,
            grid=(nb, nt),
            in_specs=[tile_spec, tile_spec, tile_spec, tile_spec, col_spec],
            out_specs=(col_spec, col_spec),
            scratch_shapes=[pltpu.VMEM((TB, 1), jnp.float32)] * 3,
        ),
        compiler_params=pltpu.CompilerParams(
            dimension_semantics=("parallel", "arbitrary"),
            vmem_limit_bytes=32 * 1024 * 1024),
        cost_estimate=cost,
    )(lp, old, lref, mask, adv)

    # Tiny final reductions over the valid rows in plain-JAX glue.
    loss = jnp.mean(rowloss[:B, 0])
    # kl.mean() in the PyTorch module averages over ALL B*T positions
    # (masked positions contribute exactly 0 because logr is pre-masked).
    kl_mean = jnp.sum(rowklsum[:B, 0]) / jnp.float32(B * T)
    return loss, kl_mean


def _reference(lp, old, lref, mask, adv, clip_lo, clip_hi, kl_w):
    lp = lp.astype(jnp.float32)
    old = old.astype(jnp.float32)
    lref = lref.astype(jnp.float32)
    mask = mask.astype(jnp.float32)
    adv = adv.astype(jnp.float32)

    logr = (lref - lp) * mask
    kl = jnp.exp(logr) - 1.0 - logr
    ratio = jnp.exp(lp - old)
    surr1 = ratio * adv
    surr2 = jnp.clip(ratio, 1.0 - clip_lo, 1.0 + clip_hi) * adv
    loss_tok = -jnp.minimum(surr1, surr2) + kl_w * kl
    per_row = jnp.sum(loss_tok * mask, axis=-1) / jnp.sum(mask, axis=-1)
    return jnp.mean(per_row), jnp.mean(kl)


if __name__ == "__main__":
    key = jax.random.PRNGKey(0)
    k1, k2, k3, k4, k5 = jax.random.split(key, 5)

    # Modest shapes that exercise tiling along both grid axes plus padding
    # (B=36 -> 2 batch tiles of 32; T=2000 -> padded to 2048 = 2 x 1024 lanes).
    B, T = 36, 2000

    log_probs = -jax.random.uniform(k1, (B, T), jnp.float32, 0.1, 2.0)
    old_log_probs = log_probs + 0.05 * jax.random.normal(k2, (B, T), jnp.float32)
    log_probs_ref = log_probs + 0.05 * jax.random.normal(k3, (B, T), jnp.float32)

    # binary mask; guarantee at least one valid token per row
    action_mask = (jax.random.uniform(k4, (B, T)) > 0.3).astype(jnp.float32)
    action_mask = action_mask.at[:, 0].set(1.0)

    # per-sequence advantages (broadcast over T inside the kernel)
    advantages = jax.random.normal(k5, (B, 1), jnp.float32)

    loss, kl_mean = grpo_loss(
        log_probs, old_log_probs, log_probs_ref, action_mask, advantages,
        clip_eps_low=0.2, clip_eps_high=0.2, kl_weight=0.01,
        policy_ops="grpo", max_resp_len=1024)
    jax.block_until_ready((loss, kl_mean))

    ref_loss, ref_kl = _reference(
        log_probs, old_log_probs, log_probs_ref, action_mask, advantages,
        0.2, 0.2, 0.01)

    assert jnp.allclose(loss, ref_loss, atol=1e-5, rtol=1e-5), (loss, ref_loss)
    assert jnp.allclose(kl_mean, ref_kl, atol=1e-5, rtol=1e-5), (kl_mean, ref_kl)

    print("KERNEL_OK")
</pallas_src>

<mosaic_0001>
module attributes {stable_mosaic.version = 11 : i64} {
  func.func @_grpo_loss_kernel(%arg0: i32, %arg1: i32, %arg2: memref<32x1024xf32, #tpu.memory_space<vmem>>, %arg3: memref<32x1024xf32, #tpu.memory_space<vmem>>, %arg4: memref<32x1024xf32, #tpu.memory_space<vmem>>, %arg5: memref<32x1024xi8, #tpu.memory_space<vmem>>, %arg6: memref<32x1xf32, #tpu.memory_space<vmem>>, %arg7: memref<32x1xf32, #tpu.memory_space<vmem>>, %arg8: memref<32x1xf32, #tpu.memory_space<vmem>>, %arg9: memref<32x1xf32, #tpu.memory_space<vmem>>, %arg10: memref<32x1xf32, #tpu.memory_space<vmem>>, %arg11: memref<32x1xf32, #tpu.memory_space<vmem>>) attributes {dimension_semantics = [#tpu.dimension_semantics<parallel>, #tpu.dimension_semantics<arbitrary>], iteration_bounds = array<i64: 2, 2>, scalar_prefetch = 0 : i64, scratch_operands = 3 : i64, tpu.core_type = #tpu.core_type<tc>, window_params = [{transform_indices = @transform_0, window_bounds = array<i64: 32, 1024>}, {transform_indices = @transform_1, window_bounds = array<i64: 32, 1024>}, {transform_indices = @transform_2, window_bounds = array<i64: 32, 1024>}, {transform_indices = @transform_3, window_bounds = array<i64: 32, 1024>}, {transform_indices = @transform_4, window_bounds = array<i64: 32, 1>}, {transform_indices = @transform_5, window_bounds = array<i64: 32, 1>}, {transform_indices = @transform_6, window_bounds = array<i64: 32, 1>}]} {
    %c0_i32 = arith.constant 0 : i32
    %0 = arith.cmpi eq, %arg1, %c0_i32 : i32
    %1 = arith.extui %0 : i1 to i32
    %c0_i32_0 = arith.constant 0 : i32
    %2 = arith.cmpi ne, %1, %c0_i32_0 : i32
    scf.if %2 {
      %cst_30 = arith.constant 0.000000e+00 : f32
      %50 = vector.broadcast %cst_30 : f32 to vector<32x1xf32>
      %c0_31 = arith.constant 0 : index
      %c0_32 = arith.constant 0 : index
      %51 = vector.load %arg9[%c0_31, %c0_32] : memref<32x1xf32, #tpu.memory_space<vmem>>, vector<32x1xf32>
      tpu.vector_store %arg9[%c0_31, %c0_32], %50 {strides = array<i32>} : memref<32x1xf32, #tpu.memory_space<vmem>>, vector<32x1xf32>,
      %cst_33 = arith.constant 0.000000e+00 : f32
      %52 = vector.broadcast %cst_33 : f32 to vector<32x1xf32>
      %c0_34 = arith.constant 0 : index
      %c0_35 = arith.constant 0 : index
      %53 = vector.load %arg10[%c0_34, %c0_35] : memref<32x1xf32, #tpu.memory_space<vmem>>, vector<32x1xf32>
      tpu.vector_store %arg10[%c0_34, %c0_35], %52 {strides = array<i32>} : memref<32x1xf32, #tpu.memory_space<vmem>>, vector<32x1xf32>,
      %cst_36 = arith.constant 0.000000e+00 : f32
      %54 = vector.broadcast %cst_36 : f32 to vector<32x1xf32>
      %c0_37 = arith.constant 0 : index
      %c0_38 = arith.constant 0 : index
      %55 = vector.load %arg11[%c0_37, %c0_38] : memref<32x1xf32, #tpu.memory_space<vmem>>, vector<32x1xf32>
      tpu.vector_store %arg11[%c0_37, %c0_38], %54 {strides = array<i32>} : memref<32x1xf32, #tpu.memory_space<vmem>>, vector<32x1xf32>,
    } else {
    }
    %c0 = arith.constant 0 : index
    %c0_1 = arith.constant 0 : index
    %3 = vector.load %arg2[%c0, %c0_1] : memref<32x1024xf32, #tpu.memory_space<vmem>>, vector<32x1024xf32>
    %c0_2 = arith.constant 0 : index
    %c0_3 = arith.constant 0 : index
    %4 = vector.load %arg3[%c0_2, %c0_3] : memref<32x1024xf32, #tpu.memory_space<vmem>>, vector<32x1024xf32>
    %c0_4 = arith.constant 0 : index
    %c0_5 = arith.constant 0 : index
    %5 = vector.load %arg5[%c0_4, %c0_5] : memref<32x1024xi8, #tpu.memory_space<vmem>>, vector<32x1024xi8>
    %6 = arith.sitofp %5 : vector<32x1024xi8> to vector<32x1024xf32>
    %c0_6 = arith.constant 0 : index
    %c0_7 = arith.constant 0 : index
    %7 = vector.load %arg6[%c0_6, %c0_7] : memref<32x1xf32, #tpu.memory_space<vmem>>, vector<32x1xf32>
    %c0_8 = arith.constant 0 : index
    %c0_9 = arith.constant 0 : index
    %8 = vector.load %arg4[%c0_8, %c0_9] : memref<32x1024xf32, #tpu.memory_space<vmem>>, vector<32x1024xf32>
    %9 = arith.subf %8, %3 : vector<32x1024xf32>
    %10 = arith.mulf %9, %6 : vector<32x1024xf32>
    %11 = math.exp %10 : vector<32x1024xf32>
    %cst = arith.constant 1.000000e+00 : f32
    %12 = vector.broadcast %cst : f32 to vector<32x1024xf32>
    %13 = arith.subf %11, %12 : vector<32x1024xf32>
    %14 = arith.subf %13, %10 : vector<32x1024xf32>
    %15 = arith.subf %3, %4 : vector<32x1024xf32>
    %16 = math.exp %15 : vector<32x1024xf32>
    %17 = vector.broadcast %7 : vector<32x1xf32> to vector<32x1024xf32>
    %18 = arith.mulf %16, %17 : vector<32x1024xf32>
    %cst_10 = arith.constant 8.000000e-01 : f32
    %cst_11 = arith.constant 1.200000e+00 : f32
    %19 = vector.broadcast %cst_10 : f32 to vector<32x1024xf32>
    %20 = arith.maximumf %19, %16 : vector<32x1024xf32>
    %21 = vector.broadcast %cst_11 : f32 to vector<32x1024xf32>
    %22 = arith.minimumf %21, %20 : vector<32x1024xf32>
    %23 = vector.broadcast %7 : vector<32x1xf32> to vector<32x1024xf32>
    %24 = arith.mulf %22, %23 : vector<32x1024xf32>
    %25 = arith.minimumf %18, %24 : vector<32x1024xf32>
    %cst_12 = arith.constant 0.000000e+00 : f32
    %26 = vector.broadcast %cst_12 : f32 to vector<32x1024xf32>
    %27 = arith.subf %26, %25 : vector<32x1024xf32>
    %cst_13 = arith.constant 0.00999999977 : f32
    %28 = vector.broadcast %cst_13 : f32 to vector<32x1024xf32>
    %29 = arith.mulf %28, %14 : vector<32x1024xf32>
    %30 = arith.addf %27, %29 : vector<32x1024xf32>
    %c0_14 = arith.constant 0 : index
    %c0_15 = arith.constant 0 : index
    %31 = vector.load %arg9[%c0_14, %c0_15] : memref<32x1xf32, #tpu.memory_space<vmem>>, vector<32x1xf32>
    %32 = arith.mulf %30, %6 : vector<32x1024xf32>
    %cst_16 = arith.constant dense<0.000000e+00> : vector<32xf32>
    %33 = vector.multi_reduction <add>, %32, %cst_16 [1] : vector<32x1024xf32> to vector<32xf32>
    %34 = vector.shape_cast %33 : vector<32xf32> to vector<32x1xf32>
    %35 = arith.addf %31, %34 : vector<32x1xf32>
    %c0_17 = arith.constant 0 : index
    %c0_18 = arith.constant 0 : index
    %36 = vector.load %arg9[%c0_17, %c0_18] : memref<32x1xf32, #tpu.memory_space<vmem>>, vector<32x1xf32>
    tpu.vector_store %arg9[%c0_17, %c0_18], %35 {strides = array<i32>} : memref<32x1xf32, #tpu.memory_space<vmem>>, vector<32x1xf32>,
    %c0_19 = arith.constant 0 : index
    %c0_20 = arith.constant 0 : index
    %37 = vector.load %arg10[%c0_19, %c0_20] : memref<32x1xf32, #tpu.memory_space<vmem>>, vector<32x1xf32>
    %cst_21 = arith.constant dense<0.000000e+00> : vector<32xf32>
    %38 = vector.multi_reduction <add>, %6, %cst_21 [1] : vector<32x1024xf32> to vector<32xf32>
    %39 = vector.shape_cast %38 : vector<32xf32> to vector<32x1xf32>
    %40 = arith.addf %37, %39 : vector<32x1xf32>
    %c0_22 = arith.constant 0 : index
    %c0_23 = arith.constant 0 : index
    %41 = vector.load %arg10[%c0_22, %c0_23] : memref<32x1xf32, #tpu.memory_space<vmem>>, vector<32x1xf32>
    tpu.vector_store %arg10[%c0_22, %c0_23], %40 {strides = array<i32>} : memref<32x1xf32, #tpu.memory_space<vmem>>, vector<32x1xf32>,
    %c0_24 = arith.constant 0 : index
    %c0_25 = arith.constant 0 : index
    %42 = vector.load %arg11[%c0_24, %c0_25] : memref<32x1xf32, #tpu.memory_space<vmem>>, vector<32x1xf32>
    %cst_26 = arith.constant dense<0.000000e+00> : vector<32xf32>
    %43 = vector.multi_reduction <add>, %14, %cst_26 [1] : vector<32x1024xf32> to vector<32xf32>
    %44 = vector.shape_cast %43 : vector<32xf32> to vector<32x1xf32>
    %45 = arith.addf %42, %44 : vector<32x1xf32>
    %c0_27 = arith.constant 0 : index
    %c0_28 = arith.constant 0 : index
    %46 = vector.load %arg11[%c0_27, %c0_28] : memref<32x1xf32, #tpu.memory_space<vmem>>, vector<32x1xf32>
    tpu.vector_store %arg11[%c0_27, %c0_28], %45 {strides = array<i32>} : memref<32x1xf32, #tpu.memory_space<vmem>>, vector<32x1xf32>,
    %c1_i32 = arith.constant 1 : i32
    %47 = arith.cmpi eq, %arg1, %c1_i32 : i32
    %48 = arith.extui %47 : i1 to i32
    %c0_i32_29 = arith.constant 0 : i32
    %49 = arith.cmpi ne, %48, %c0_i32_29 : i32
    scf.if %49 {
      %c0_30 = arith.constant 0 : index
      %c0_31 = arith.constant 0 : index
      %50 = vector.load %arg9[%c0_30, %c0_31] : memref<32x1xf32, #tpu.memory_space<vmem>>, vector<32x1xf32>
      %c0_32 = arith.constant 0 : index
      %c0_33 = arith.constant 0 : index
      %51 = vector.load %arg10[%c0_32, %c0_33] : memref<32x1xf32, #tpu.memory_space<vmem>>, vector<32x1xf32>
      %52 = arith.divf %50, %51 : vector<32x1xf32>
      %c0_34 = arith.constant 0 : index
      %c0_35 = arith.constant 0 : index
      %53 = vector.load %arg7[%c0_34, %c0_35] : memref<32x1xf32, #tpu.memory_space<vmem>>, vector<32x1xf32>
      tpu.vector_store %arg7[%c0_34, %c0_35], %52 {strides = array<i32>} : memref<32x1xf32, #tpu.memory_space<vmem>>, vector<32x1xf32>,
      %c0_36 = arith.constant 0 : index
      %c0_37 = arith.constant 0 : index
      %54 = vector.load %arg11[%c0_36, %c0_37] : memref<32x1xf32, #tpu.memory_space<vmem>>, vector<32x1xf32>
      %c0_38 = arith.constant 0 : index
      %c0_39 = arith.constant 0 : index
      %55 = vector.load %arg8[%c0_38, %c0_39] : memref<32x1xf32, #tpu.memory_space<vmem>>, vector<32x1xf32>
      tpu.vector_store %arg8[%c0_38, %c0_39], %54 {strides = array<i32>} : memref<32x1xf32, #tpu.memory_space<vmem>>, vector<32x1xf32>,
    } else {
    }
    return
  }
  func.func @transform_0(%arg0: i32, %arg1: i32) -> (i32, i32) {
    %c0_i32 = arith.constant 0 : i32
    return %arg0, %arg1 : i32, i32
  }
  func.func @transform_1(%arg0: i32, %arg1: i32) -> (i32, i32) {
    %c0_i32 = arith.constant 0 : i32
    return %arg0, %arg1 : i32, i32
  }
  func.func @transform_2(%arg0: i32, %arg1: i32) -> (i32, i32) {
    %c0_i32 = arith.constant 0 : i32
    return %arg0, %arg1 : i32, i32
  }
  func.func @transform_3(%arg0: i32, %arg1: i32) -> (i32, i32) {
    %c0_i32 = arith.constant 0 : i32
    return %arg0, %arg1 : i32, i32
  }
  func.func @transform_4(%arg0: i32, %arg1: i32) -> (i32, i32) {
    %c0_i32 = arith.constant 0 : i32
    %c0_i32_0 = arith.constant 0 : i32
    return %arg0, %c0_i32 : i32, i32
  }
  func.func @transform_5(%arg0: i32, %arg1: i32) -> (i32, i32) {
    %c0_i32 = arith.constant 0 : i32
    %c0_i32_0 = arith.constant 0 : i32
    return %arg0, %c0_i32 : i32, i32
  }
  func.func @transform_6(%arg0: i32, %arg1: i32) -> (i32, i32) {
    %c0_i32 = arith.constant 0 : i32
    %c0_i32_0 = arith.constant 0 : i32
    return %arg0, %c0_i32 : i32, i32
  }
}

</mosaic_0001>

<bundles_post_ra>
// kernel: tpu_custom_call.1
= control target key start
LH: loop header
LB: loop body
LE: loop exit
PB: predicated region body
PF: predicated region fallthrough
CT: control target
= control target key end

     0   :  { %s3415_s0 = inlined_call_operand.hbm [shape: f32[64,2048], index: 0, kind: input, shape index: {}]   ;;  %s3416_s1 = inlined_call_operand.hbm [shape: f32[64,2048], index: 1, kind: input, shape index: {}]   ;;  %s3417_s2 = inlined_call_operand.hbm [shape: f32[64,2048], index: 2, kind: input, shape index: {}]   ;;  %s3418_s3 = inlined_call_operand.hbm [shape: s8[64,2048], index: 3, kind: input, shape index: {}]   ;;  %s3419_s4 = inlined_call_operand.vmem [shape: f32[64,1], index: 4, kind: input, shape index: {}]   ;;  %s3420_s5 = inlined_call_operand.vmem [shape: f32[64,1], index: 5, kind: output, shape index: {0}]   ;;  %s3421_s6 = inlined_call_operand.vmem [shape: f32[64,1], index: 6, kind: output, shape index: {1}]  }
   0x1   :  { %3498 = sst [smem:[#allocation111_spill]] %s3415_s0 }
   0x2   :  { %3499 = sst [smem:[#allocation112_spill]] %s3416_s1 }
   0x3   :  { %3500 = sst [smem:[#allocation113_spill]] %s3421_s6 }
   0x4   :  { %12 = vsyncpa [#allocation6], 0 }
   0x5   :  { %14 = vsyncpa [#allocation6 + $0x1], 0 }
   0x6   :  { %15 = vsyncpa [#allocation8], 0 }
   0x7   :  { %17 = vsyncpa [#allocation8 + $0x1], 0 }
   0x8   :  { %18 = vsyncpa [#allocation11], 0 }
   0x9   :  { %20 = vsyncpa [#allocation11 + $0x1], 0  ;;  %s2161_s21 = smov 0   ;;  %s2163_s22 = smov 0  }
   0xa   :  { %s2165_s23 = smov 0   ;;  %s2167_s24 = smov 0  }
   0xb   :  { %s2169_s25 = smov 0   ;;  %s2171_s26 = smov 0  }
   0xc   :  { %s2173_s27 = smov 0   ;;  %s2175_s28 = smov 0  }
   0xd LB: > { %3501 = sst [smem:[#allocation15_spill]] %s2095_s23  ;;  %s3422_s29 = sadd.s32 4294967295, %s2115_s28   ;;  %s2115_s28 = sphi %s2175_s28, %s26_s28   ;;  %s2111_s27 = sphi %s2173_s27, %s3760_s27   ;;  %s2107_s26 = sphi %s2171_s26, %s3759_s26   ;;  %s2103_s25 = sphi %s2169_s25, %s3758_s25   ;;  %s2099_s24 = sphi %s2167_s24, %s3757_s24   ;;  %s2095_s23 = sphi %s2165_s23, %s3752_s23   ;;  %s2091_s22 = sphi %s2163_s22, %s3756_s22   ;;  %s2087_s21 = sphi %s2161_s21, %s3755_s21  }
   0xe   : > { %3502 = sst [smem:[#allocation16_spill]] %s2099_s24  ;;  %s35_s30 = sadd.s32 1, %s2107_s26 }
   0xf   : > { %p36_p0 = scmp.ge.s32.totalorder %s35_s30, 2  ;;  %s38_s7 = sadd.s32 1, %s2111_s27 }
  0x10   : > { %s47_s8 = sadd.s32 1, %s2095_s23  ;;  %p54_p1 = scmp.ne.s32.totalorder %s2095_s23, %s2091_s22 }
  0x11   : > { %s3762_s30 = smov (%p36_p0, %s35_s30), 0  ;;  %s3764_s7 = smov (!%p36_p0, %s38_s7), %s2111_s27 }
  0x12   : > { %3503 = sst [smem:[#allocation17_spill]] %s3762_s30  ;;  %s43_s9 = ssub.s32 %s2107_s26, %s3762_s30 }
  0x13   : > { %p55_p2 = scmp.eq.s32.totalorder %s2115_s28, 0  ;;  %p40_p3 = scmp.ge.s32.totalorder %s3764_s7, 2 }
  0x14   : > { %p60_p4 = scmp.ne.s32.totalorder %s2091_s22, %s2087_s21  ;;  %p61_p6 = scmp.eq.s32.totalorder %s3422_s29, 0 }
  0x15   : > { %p2212_p5 = por %p55_p2, %p54_p1  ;;  %s3766_s7 = smov (%p40_p3, %s3764_s7), 0 }
  0x16   : > { %3505 = sst [smem:[#allocation18_spill]] %s3766_s7  ;;  %p2220_p7 = por %p61_p6, %p60_p4 }
  0x17   : > { %s42_s12 = ssub.s32 %s2111_s27, %s3766_s7  ;;  %p1721_p8 = scmp.lt.s32.totalorder %s2115_s28, 4 }
  0x18   : > { %s44_s13 = sor.u32 %s43_s9, %s42_s12  ;;  %s2228_s14 = sand.u32 1, %s2095_s23  }
  0x19   : > { %p45_p9 = scmp.eq.s32.totalorder %s44_s13, 0  ;;  %s2231_s15 = sshll.u32 %s2228_s14, 8 }
  0x1a   : > { %s3424_s16 = sshll.u32 %s2107_s26, 3  ;;  %s1697_s17 = sshll.u32 %s2111_s27, 6 }
  0x1b   : > { %s2236_s18 = scalar_select %p45_p9, %s2095_s23, %s47_s8  }
  0x1c   : > { %s257_s19 = sadd.s32 %s1697_s17, %s3424_s16  ;;  %p2242_p10 = pnand %p1721_p8, %p2212_p5 }
  0x1d   : > { %3507 = sst [smem:[#allocation19_spill]] %s2236_s18  ;;  %s2246_s21 = sshll.u32 %s257_s19, 7 }
  0x1e   : > { %s270_s9 = sand.u32 1, %s2115_s28   ;;  %s3509_s1 = sld [smem:[#allocation112_spill]] }
  0x1f   : > { %s274_s7 = scalar_lea.vmem [#allocation7], %s2231_s15  ;;  %p1650_p11 = scmp.ge.s32.totalorder %s2115_s28, 1 }
  0x20   : > { %s284_s8 = sshll.u32 %s274_s7, 4  ;;  %s2255_s17 = scalar_lea.sflag [#allocation8], %s270_s9  ;;  %s285_s8 = int_to_ptr.vmem [resolvable:$true] %s284_s8 }
  0x21   : > { %p1931_p12 = pneg %p2242_p10  ;;  %s1942_s10 = scalar_lea.vmem %s285_s8, 4096 }
  0x22   : > { %p1943_p13 = scmp.ne.s32.totalorder %s285_s8, %s1942_s10  ;;  %s2117_s19 = smov [#allocation7]  }
  0x23   : > { %s1947_s16 = sshll.u32 %s2117_s19, 4  ;;  %s1948_s16 = int_to_ptr.vmem [resolvable:$false] %s1947_s16 }
  0x24   : > { %s283_s29 = scalar_lea.hbm %s3509_s1, %s2246_s21  ;;  %p1945_p0 = pnand %p1943_p13, %p1931_p12 }
  0x25   : > { %s1949_s30 = scalar_lea.vmem %s1948_s16, 8192  ;;  %p1950_p2 = scmp.lt.s32.totalorder %s285_s8, %s1948_s16 }
  0x26   : > { %p1946_p1 = pneg %p1945_p0  ;;  %p1951_p3 = scmp.lt.s32.totalorder %s1949_s30, %s1942_s10 }
  0x28   : > { %p1952_p4 = por %p1951_p3, %p1950_p2 }
  0x2a   : > { %p1953_p5 = pnand %p1952_p4, %p1946_p1 }
  0x2c   : > { %1956 = shalt.err (!%p1953_p5)
}
  0x2d   : > { %s3427_s7 = smov 2048   ;;  %s2119_s9 = smov 1024  }
  0x2e   : > { %s2120_s12 = smov 64   ;;  %p346_p6 = scmp.lt.s32.totalorder %s2115_s28, 5 }
  0x2f   : > { %1714 = dma.hbm_to_vmem [thread:$0]  (!%p2242_p10), %s283_s29, 4096, %s285_s8, %s2255_s17, %s3427_s7, %s2119_s9, %s2120_s12  }
  0x30   : > { %p2271_p8 = pnand %p1650_p11, %p346_p6  ;;  %s3511_s0 = sld [smem:[#allocation111_spill]] }
  0x31   : > { %s250_s19 = scalar_lea.vmem [#allocation5], %s2231_s15  ;;  %s247_s18 = scalar_lea.sflag [#allocation6], %s2228_s14 }
  0x32   : > { %s260_s1 = sshll.u32 %s250_s19, 4  ;;  %s2121_s29 = smov [#allocation5]   ;;  %s261_s1 = int_to_ptr.vmem [resolvable:$true] %s260_s1 }
  0x33   : > { %s1970_s23 = scalar_lea.vmem %s261_s1, 4096  ;;  %s1975_s8 = sshll.u32 %s2121_s29, 4  ;;  %s1976_s8 = int_to_ptr.vmem [resolvable:$false] %s1975_s8 }
  0x34   : > { %p1971_p9 = scmp.ne.s32.totalorder %s261_s1, %s1970_s23  ;;  %s1977_s7 = scalar_lea.vmem %s1976_s8, 8192 }
  0x35   : > { %p1978_p11 = scmp.lt.s32.totalorder %s261_s1, %s1976_s8  ;;  %p1979_p1 = scmp.lt.s32.totalorder %s1977_s7, %s1970_s23 }
  0x36   : > { %s259_s10 = scalar_lea.hbm %s3511_s0, %s2246_s21  ;;  %p1973_p13 = pnand %p1971_p9, %p1931_p12 }
  0x37   : > { %p1980_p2 = por %p1979_p1, %p1978_p11 }
  0x38   : > { %p1974_p0 = pneg %p1973_p13 }
  0x3a   : > { %p1981_p3 = pnand %p1980_p2, %p1974_p0 }
  0x3c   : > { %1984 = shalt.err (!%p1981_p3)
}
  0x3d   : > { %s3512_s16 = smov 2048   ;;  %s307_s29 = scalar_lea.hbm %s3417_s2, %s2246_s21 }
  0x3e   : > { %1711 = dma.hbm_to_vmem [thread:$0]  (!%p2242_p10), %s259_s10, 4096, %s261_s1, %s247_s18, %s3512_s16, %s2119_s9, %s2120_s12  }
  0x3f   : > { %s298_s0 = scalar_lea.vmem [#allocation9], %s2231_s15  ;;  %s2122_s7 = smov [#allocation9]  }
  0x40   : > { %s308_s24 = sshll.u32 %s298_s0, 4  ;;  %s2003_s8 = sshll.u32 %s2122_s7, 4  ;;  %s309_s24 = int_to_ptr.vmem [resolvable:$true] %s308_s24  ;;  %s2004_s8 = int_to_ptr.vmem [resolvable:$false] %s2003_s8 }
  0x41   : > { %s1998_s23 = scalar_lea.vmem %s309_s24, 4096  ;;  %s2005_s6 = scalar_lea.vmem %s2004_s8, 8192 }
  0x42   : > { %p1999_p4 = scmp.ne.s32.totalorder %s309_s24, %s1998_s23  ;;  %p2006_p9 = scmp.lt.s32.totalorder %s309_s24, %s2004_s8 }
  0x43   : > { %p2007_p13 = scmp.lt.s32.totalorder %s2005_s6, %s1998_s23 }
  0x44   : > { %p2001_p5 = pnand %p1999_p4, %p1931_p12 }
  0x45   : > { %p2008_p0 = por %p2007_p13, %p2006_p9 }
  0x46   : > { %p2002_p6 = pneg %p2001_p5 }
  0x48   : > { %p2009_p11 = pnand %p2008_p0, %p2002_p6 }
  0x4a   : > { %2012 = shalt.err (!%p2009_p11)
}
  0x4b   : > { %1717 = dma.hbm_to_vmem [thread:$0]  (!%p2242_p10), %s307_s29, 4096, %s309_s24, %s2255_s17, %s3512_s16, %s2119_s9, %s2120_s12  }
  0x4c   : > { %s1646_s0 = sshll.u32 %s2228_s14, 6  ;;  %s1648_s1 = sshll.u32 %s2111_s27, 4 }
  0x4d   : > { %s3513_s15 = sshll.u32 %s2107_s26, 3  ;;  %s322_s21 = scalar_lea.vmem [#allocation10], %s1646_s0 }
  0x4e   : > { %s328_s18 = sadd.s32 %s1648_s1, %s3513_s15  ;;  %s332_s10 = sshll.u32 %s322_s21, 4  ;;  %s333_s10 = int_to_ptr.vmem [resolvable:$true] %s332_s10 }
  0x4f   : > { %s1649_s6 = sshll.u32 %s328_s18, 7  ;;  %s319_s7 = scalar_lea.sflag [#allocation11], %s2228_s14 }
  0x50   : > { %s330_s23 = scalar_lea.hbm %s3418_s3, %s1649_s6  ;;  %s2026_s8 = scalar_lea.vmem %s333_s10, 1024 }
  0x51   : > { %p2027_p1 = scmp.ne.s32.totalorder %s333_s10, %s2026_s8  ;;  %s2123_s24 = smov [#allocation10]  }
  0x52   : > { %s2031_s17 = sshll.u32 %s2123_s24, 4  ;;  %s2032_s17 = int_to_ptr.vmem [resolvable:$false] %s2031_s17 }
  0x53   : > { %p2029_p2 = pnand %p2027_p1, %p1931_p12  ;;  %s2033_s9 = scalar_lea.vmem %s2032_s17, 2048 }
  0x54   : > { %p2034_p4 = scmp.lt.s32.totalorder %s333_s10, %s2032_s17  ;;  %p2035_p5 = scmp.lt.s32.totalorder %s2033_s9, %s2026_s8 }
  0x55   : > { %p2030_p3 = pneg %p2029_p2 }
  0x56   : > { %p2036_p6 = por %p2035_p5, %p2034_p4 }
  0x58   : > { %p2037_p9 = pnand %p2036_p6, %p2030_p3 }
  0x5a   : > { %2040 = shalt.err (!%p2037_p9)
}
  0x5b   : > { %1720 = dma.hbm_to_vmem [thread:$0]  (!%p2242_p10), %s330_s23, 1024, %s333_s10, %s319_s7  }
  0x5c   : > { %350 = sbr.rel (%p2271_p8) target bundleno = 496 (0x1f0), region = 40 }
  0x61   : > { %s352_s14 = sand.u32 1, %s2091_s22  }
  0x62   : > { %s1651_s12 = sshll.u32 %s352_s14, 8  ;;  %s353_s16 = scalar_lea.sflag [#allocation6], %s352_s14 }
  0x63   : > { %s2319_s29 = scalar_lea.vmem [#allocation5], %s1651_s12 }
  0x64   : > { %2074 = dma.done.wait (%p2220_p7), %s353_s16, 4096  }
  0x65   : > { %2076 = vsyncadd (%p2220_p7), %s353_s16, 4294963200  ;;  %s3514_s0 = sadd.s32 4294967295, %s2115_s28   ;;  %s2327_s15 = scalar_lea.vmem [#allocation7], %s1651_s12 }
  0x66   : > { %s361_s20 = sand.u32 1, %s3514_s0  }
  0x67   : > { %s362_s1 = scalar_lea.sflag [#allocation8], %s361_s20 }
  0x68   : > { %2078 = dma.done.wait (%p2220_p7), %s362_s1, 8192  }
  0x69   : > { %2080 = vsyncadd (%p2220_p7), %s362_s1, 4294959104  ;;  %s1654_s30 = sshll.u32 %s352_s14, 6  ;;  %s2333_s18 = scalar_lea.vmem [#allocation9], %s1651_s12 }
  0x6a   : > { %s380_s6 = scalar_lea.sflag [#allocation11], %s352_s14  ;;  %s2335_s21 = scalar_lea.vmem [#allocation10], %s1654_s30 }
  0x6b   : > { %2082 = dma.done.wait (%p2220_p7), %s380_s6, 1024  }
  0x6c   : > { %2084 = vsyncadd (%p2220_p7), %s380_s6, 4294966272  ;;  %s1655_s10 = sshll.u32 %s2103_s25, 2  ;;  %s3515_s12 = sld [smem:[#allocation113_spill]] }
  0x6d   : > { %p445_p10 = scmp.lt.s32.totalorder %s1655_s10, 7  ;;  %s3516_s16 = sld [smem:[#allocation16_spill]] }
  0x6f   : > { %s3768_s10 = smov (!%p445_p10, %s1655_s10), 7 }
  0x70   : > { %s1656_s13 = sshll.u32 %s3768_s10, 3 }
  0x71   : > { %s2345_s7 = scalar_lea.vmem %s3419_s4, %s1656_s13  ;;  %s2350_s17 = scalar_lea.vmem %s3420_s5, %s1656_s13 }
  0x72   : > { %s2355_s11 = scalar_lea.vmem %s3515_s12, %s1656_s13 }
  0x73   : > { %p1661_p7 = scmp.ne.s32.totalorder %s3516_s16, 0 }
  0x75   : > { %465 = sbr.rel (%p1661_p7) target bundleno = 129 (0x81), region = 60 }
  0x7a   : > { %vm466_vm0 = vcmask 7168   ;;  %v2124_v0 = vmov 0.0  }
  0x7b   : > { %467 = vst.msk [vmem:[#allocation2] sm:$0xff] %vm466_vm0, %v2124_v0  ;;  %468 = vst.msk [vmem:[#allocation2 + $0x8] sm:$0xff] %vm466_vm0, %v2124_v0 }
  0x7c   : > { %469 = vst.msk [vmem:[#allocation2 + $0x10] sm:$0xff] %vm466_vm0, %v2124_v0  ;;  %470 = vst.msk [vmem:[#allocation2 + $0x18] sm:$0xff] %vm466_vm0, %v2124_v0 }
  0x7d   : > { %471 = vst.msk [vmem:[#allocation3] sm:$0xff] %vm466_vm0, %v2124_v0  ;;  %472 = vst.msk [vmem:[#allocation3 + $0x8] sm:$0xff] %vm466_vm0, %v2124_v0 }
  0x7e   : > { %473 = vst.msk [vmem:[#allocation3 + $0x10] sm:$0xff] %vm466_vm0, %v2124_v0  ;;  %474 = vst.msk [vmem:[#allocation3 + $0x18] sm:$0xff] %vm466_vm0, %v2124_v0 }
  0x7f   : > { %475 = vst.msk [vmem:[#allocation4] sm:$0xff] %vm466_vm0, %v2124_v0  ;;  %476 = vst.msk [vmem:[#allocation4 + $0x8] sm:$0xff] %vm466_vm0, %v2124_v0 }
  0x80   : > { %477 = vst.msk [vmem:[#allocation4 + $0x10] sm:$0xff] %vm466_vm0, %v2124_v0  ;;  %478 = vst.msk [vmem:[#allocation4 + $0x18] sm:$0xff] %vm466_vm0, %v2124_v0 }
  0x81 PF: > { %v617_v1 = vld [vmem:[%s2345_s7 + $0x10] sm:$0xff]  ;;  %v615_v2 = vld [vmem:[%s2345_s7] sm:$0xff]  ;;  %v2125_v3 = vmov 0   ;;  %v618_v4 = vld [vmem:[%s2345_s7 + $0x18] sm:$0xff]  ;;  %vm1291_vm1 = vcmask 7168   ;;  %s3750_s25 = sld [smem:[#allocation16_spill]] }
  0x82   : > { %1792 = vset.pattern.permute.xlu1 %v2125_v3  ;;  %1791 = vset.pattern.permute.xlu0 %v2125_v3  ;;  %v2362_v5 = vld [vmem:[%s2335_s21] sm:$0xff]  ;;  %v2365_v6 = vld [vmem:[%s2335_s21 + $0x8] sm:$0xff]  ;;  %v2368_v7 = vld [vmem:[%s2335_s21 + $0x10] sm:$0xff] }
  0x83   : > { %951 = vperm.xlu1 %1792, %v617_v1   ;;  %941 = vperm.xlu0 %1791, %v615_v2   ;;  %v2371_v8 = vld [vmem:[%s2335_s21 + $0x18] sm:$0xff]  ;;  %v2374_v9 = vld [vmem:[%s2335_s21 + $0x20] sm:$0xff]  ;;  %v559_v10 = vunpack.c.1.s8 %v2362_v5  ;;  %v560_v11 = vunpack.c.1.s8 %v2365_v6  ;;  %v616_v12 = vld [vmem:[%s2345_s7 + $0x8] sm:$0xff]  ;;  %v561_v15 = vunpack.c.1.s8 %v2368_v7  ;;  %v575_v18 = vunpack.c.3.s8 %v2362_v5 }
  0x84   : > { %v2380_v13 = vld [vmem:[%s2335_s21 + $0x28] sm:$0xff]  ;;  %v2383_v14 = vld [vmem:[%s2335_s21 + $0x30] sm:$0xff]  ;;  %v562_v16 = vunpack.c.1.s8 %v2371_v8  ;;  %v563_v17 = vunpack.c.1.s8 %v2374_v9  ;;  %v2390_v19 = vld [vmem:[%s2335_s21 + $0x38] sm:$0xff]  ;;  %v576_v22 = vunpack.c.3.s8 %v2365_v6  ;;  %v577_v23 = vunpack.c.3.s8 %v2368_v7 }
  0x85   : > { %v564_v20 = vunpack.c.1.s8 %v2380_v13  ;;  %v565_v21 = vunpack.c.1.s8 %v2383_v14  ;;  %v566_v24 = vunpack.c.1.s8 %v2390_v19  ;;  %v2397_v25 = vcvt.s32.f32 %v559_v10  ;;  %v643_v36 = vld [vmem:[%s2333_s18 + $0xc0] sm:$0xff]  ;;  %v644_v37 = vld [vmem:[%s2333_s18 + $0xc8] sm:$0xff]  ;;  %v645_v38 = vld [vmem:[%s2333_s18 + $0xd0] sm:$0xff] }
  0x86   : > { %v2399_v26 = vcvt.s32.f32 %v560_v11  ;;  %v2401_v27 = vcvt.s32.f32 %v561_v15  ;;  %v2403_v28 = vcvt.s32.f32 %v562_v16  ;;  %v2405_v29 = vcvt.s32.f32 %v563_v17  ;;  %v646_v43 = vld [vmem:[%s2333_s18 + $0xd8] sm:$0xff]  ;;  %v647_v44 = vld [vmem:[%s2333_s18 + $0xe0] sm:$0xff]  ;;  %v648_v45 = vld [vmem:[%s2333_s18 + $0xe8] sm:$0xff] }
  0x87   : > { %3517 = vst [vmem:[#allocation20_spill] sm:$0xff] %v2397_v25  ;;  %956 = vperm.xlu1 %1792, %v618_v4   ;;  %946 = vperm.xlu0 %1791, %v616_v12   ;;  %v2407_v30 = vcvt.s32.f32 %v564_v20  ;;  %v578_v31 = vunpack.c.3.s8 %v2371_v8  ;;  %v579_v33 = vunpack.c.3.s8 %v2374_v9  ;;  %v580_v34 = vunpack.c.3.s8 %v2380_v13  ;;  %v649_v50 = vld [vmem:[%s2333_s18 + $0xf0] sm:$0xff]  ;;  %v650_v51 = vld [vmem:[%s2333_s18 + $0xf8] sm:$0xff]  ;;  %v2438_v52 = vld [vmem:[%s2319_s29 + $0xc0] sm:$0xff]  ;;  %p1694_p12 = scmp.ne.s32.totalorder %s3750_s25, 1 }
  0x88   : > { %3518 = vst [vmem:[#allocation21_spill] sm:$0xff] %v2399_v26  ;;  %3519 = vst [vmem:[#allocation22_spill] sm:$0xff] %v2401_v27  ;;  %v1309_v32 = vadd.f32 %v2399_v26, %v2397_v25  ;;  %v581_v35 = vunpack.c.3.s8 %v2383_v14  ;;  %v582_v39 = vunpack.c.3.s8 %v2390_v19  ;;  %v2419_v40 = vcvt.s32.f32 %v575_v18  ;;  %v2447_v56 = vld [vmem:[%s2319_s29 + $0xc8] sm:$0xff]  ;;  %v2450_v57 = vld [vmem:[%s2319_s29 + $0xd0] sm:$0xff] }
  0x89   : > { %3520 = vst [vmem:[#allocation23_spill] sm:$0xff] %v2403_v28  ;;  %3521 = vst [vmem:[#allocation24_spill] sm:$0xff] %v2405_v29  ;;  %v2421_v41 = vcvt.s32.f32 %v576_v22  ;;  %v2423_v42 = vcvt.s32.f32 %v577_v23  ;;  %v2429_v47 = vcvt.s32.f32 %v578_v31  ;;  %v2431_v48 = vcvt.s32.f32 %v579_v33  ;;  %v2453_v58 = vld [vmem:[%s2319_s29 + $0xd8] sm:$0xff]  ;;  %v2458_v61 = vld [vmem:[%s2319_s29 + $0xe0] sm:$0xff] }
  0x8a   : > { %3522 = vst [vmem:[#allocation25_spill] sm:$0xff] %v2407_v30  ;;  %3523 = vst [vmem:[#allocation26_spill] sm:$0xff] %v2419_v40  ;;  %v1310_v46 = vadd.f32 %v1309_v32, %v2401_v27  ;;  %v2433_v49 = vcvt.s32.f32 %v580_v34  ;;  %v2440_v53 = vcvt.s32.f32 %v581_v35  ;;  %v2442_v54 = vcvt.s32.f32 %v582_v39  ;;  %v2461_v62 = vld [vmem:[%s2319_s29 + $0xe8] sm:$0xff]  ;;  %v2464_v63 = vld [vmem:[%s2319_s29 + $0xf0] sm:$0xff] }
  0x8b   : > { %3524 = vst [vmem:[#allocation27_spill] sm:$0xff] %v2421_v41  ;;  %3525 = vst [vmem:[#allocation28_spill] sm:$0xff] %v2423_v42  ;;  %v1327_v55 = vadd.f32 %v2421_v41, %v2419_v40  ;;  %v675_v59 = vsub.f32 %v643_v36, %v2438_v52  ;;  %v676_v0 = vsub.f32 %v644_v37, %v2447_v56  ;;  %v2471_v4 = vld [vmem:[%s2319_s29 + $0xf8] sm:$0xff]  ;;  %v2494_v32 = vcvt.s32.f32 %v565_v21  ;;  %v535_v34 = vld [vmem:[%s2327_s15 + $0xc0] sm:$0xff] }
  0x8c   : > { %3526 = vst [vmem:[#allocation29_spill] sm:$0xff] %v2429_v47  ;;  %3527 = vst [vmem:[#allocation30_spill] sm:$0xff] %v2431_v48  ;;  %v1311_v60 = vadd.f32 %v1310_v46, %v2403_v28  ;;  %v677_v1 = vsub.f32 %v645_v38, %v2450_v57  ;;  %v678_v2 = vsub.f32 %v646_v43, %v2453_v58  ;;  %v536_v35 = vld [vmem:[%s2327_s15 + $0xc8] sm:$0xff]  ;;  %v537_v46 = vld [vmem:[%s2327_s15 + $0xd0] sm:$0xff] }
  0x8d   : > { %3528 = vst [vmem:[#allocation31_spill] sm:$0xff] %v2433_v49  ;;  %3529 = vst [vmem:[#allocation32_spill] sm:$0xff] %v2440_v53  ;;  %v1328_v3 = vadd.f32 %v1327_v55, %v2423_v42  ;;  %v679_v10 = vsub.f32 %v647_v44, %v2458_v61  ;;  %v680_v11 = vsub.f32 %v648_v45, %v2461_v62  ;;  %v2511_v44 = vcvt.s32.f32 %v566_v24 }
  0x8e   : > { %3530 = vst [vmem:[#allocation33_spill] sm:$0xff] %v2442_v54  ;;  %v681_v12 = vsub.f32 %v649_v50, %v2464_v63  ;;  %v1312_v15 = vadd.f32 %v1311_v60, %v2405_v29  ;;  %v682_v16 = vsub.f32 %v650_v51, %v2471_v4  ;;  %v2479_v17 = vmul.f32 %v675_v59, %v2419_v40  ;;  %v538_v50 = vld [vmem:[%s2327_s15 + $0xd8] sm:$0xff]  ;;  %v539_v60 = vld [vmem:[%s2327_s15 + $0xe0] sm:$0xff] }
  0x8f   : > { %v2482_v18 = vmul.f32 %v676_v0, %v2421_v41  ;;  %v1329_v20 = vadd.f32 %v1328_v3, %v2429_v47  ;;  %v2486_v22 = vmul.f32 %v677_v1, %v2423_v42  ;;  %v2489_v23 = vmul.f32 %v678_v2, %v2429_v47  ;;  %3536 = vst [vmem:[#allocation39_spill] sm:$0xff] %v2494_v32  ;;  %v2639_v42 = vld [vmem:[%s2319_s29 + $0xa8] sm:$0xff] }
  0x90   : > { %3531 = vst [vmem:[#allocation34_spill] sm:$0xff] %v2479_v17  ;;  %v2492_v31 = vmul.f32 %v679_v10, %v2431_v48  ;;  %v1313_v33 = vadd.f32 %v1312_v15, %v2407_v30  ;;  %v2500_v36 = vmul.f32 %v680_v11, %v2433_v49  ;;  %v2503_v37 = vmul.f32 %v681_v12, %v2440_v53  ;;  %v540_v11 = vld [vmem:[%s2327_s15 + $0xe8] sm:$0xff]  ;;  %v541_v12 = vld [vmem:[%s2327_s15 + $0xf0] sm:$0xff] }
  0x91   : > { %3532 = vst [vmem:[#allocation35_spill] sm:$0xff] %v2482_v18  ;;  %3533 = vst [vmem:[#allocation36_spill] sm:$0xff] %v2486_v22  ;;  %v1330_v38 = vadd.f32 %v1329_v20, %v2431_v48  ;;  %v763_v39 = vmul.f32 1.442695, %v2479_v17  ;;  %v765_v43 = vmul.f32 1.442695, %v2482_v18  ;;  %v2517_v51 = vmul.f32 %v682_v16, %v2442_v54 }
  0x92   : > { %3534 = vst [vmem:[#allocation37_spill] sm:$0xff] %v2489_v23  ;;  %3535 = vst [vmem:[#allocation38_spill] sm:$0xff] %v2492_v31  ;;  %v767_v21 = vmul.f32 1.442695, %v2486_v22  ;;  %v1314_v45 = vadd.f32 %v1313_v33, %v2494_v32  ;;  %v769_v55 = vmul.f32 1.442695, %v2489_v23  ;;  %v867_v2 = vsub.f32 %v2438_v52, %v535_v34 }
  0x93   : > { %3537 = vst [vmem:[#allocation40_spill] sm:$0xff] %v2500_v36  ;;  %3538 = vst [vmem:[#allocation41_spill] sm:$0xff] %v2503_v37  ;;  %v1331_v59 = vadd.f32 %v1330_v38, %v2433_v49  ;;  %1793 = vpow2.f32 %v763_v39  ;;  %v771_v0 = vmul.f32 1.442695, %v2492_v31  ;;  %v773_v24 = vmul.f32 1.442695, %v2500_v36 }
  0x94   : > { %3539 = vst [vmem:[#allocation42_spill] sm:$0xff] %v2511_v44  ;;  %3540 = vst [vmem:[#allocation43_spill] sm:$0xff] %v2517_v51  ;;  %1795 = vpow2.f32 %v765_v43  ;;  %v775_v1 = vmul.f32 1.442695, %v2503_v37  ;;  %v868_v3 = vsub.f32 %v2447_v56, %v536_v35  ;;  %v869_v15 = vsub.f32 %v2450_v57, %v537_v46  ;;  %v2653_v31 = vld [vmem:[%s2319_s29 + $0xb8] sm:$0xff]  ;;  %v633_v17 = vld [vmem:[%s2333_s18 + $0x70] sm:$0xff] }
  0x95   : > { %v1332_v10 = vadd.f32 %v1331_v59, %v2440_v53  ;;  %1797 = vpow2.f32 %v767_v21  ;;  %v870_v16 = vsub.f32 %v2453_v58, %v538_v50  ;;  %v777_v20 = vmul.f32 1.442695, %v2517_v51 }
  0x96   : > { %1799 = vpow2.f32 %v769_v55  ;;  %v871_v33 = vsub.f32 %v2458_v61, %v539_v60  ;;  %v2535_v38 = vadd.f32 %v1314_v45, %v2511_v44  ;;  %v923_v52 = vmul.f32 1.442695, %v867_v2 }
  0x97   : > { %1801 = vpow2.f32 %v771_v0  ;;  %v872_v56 = vsub.f32 %v2461_v62, %v540_v11  ;;  %v873_v34 = vsub.f32 %v2464_v63, %v541_v12  ;;  %v925_v35 = vmul.f32 1.442695, %v868_v3 }
  0x98   : > { %1803 = vpow2.f32 %v773_v24  ;;  %v2540_v57 = vadd.f32 %v1332_v10, %v2442_v54  ;;  %v927_v58 = vmul.f32 1.442695, %v869_v15  ;;  %v929_v39 = vmul.f32 1.442695, %v870_v16 }
  0x99   : > { %1805 = vpow2.f32 %v775_v1  ;;  %v931_v43 = vmul.f32 1.442695, %v871_v33  ;;  %v551_v61 = vunpack.c.0.s8 %v2362_v5  ;;  %v552_v21 = vunpack.c.0.s8 %v2365_v6 }
  0x9a   : > { %1807 = vpow2.f32 %v777_v20  ;;  %v553_v45 = vunpack.c.0.s8 %v2368_v7  ;;  %v554_v62 = vunpack.c.0.s8 %v2371_v8  ;;  %v555_v63 = vunpack.c.0.s8 %v2374_v9 }
  0x9b   : > { %1809 = vpow2.f32 %v923_v52  ;;  %v933_v46 = vmul.f32 1.442695, %v872_v56  ;;  %v556_v50 = vunpack.c.0.s8 %v2380_v13  ;;  %v557_v55 = vunpack.c.0.s8 %v2383_v14 }
  0x9c   : > { %1811 = vpow2.f32 %v925_v35  ;;  %v558_v59 = vunpack.c.0.s8 %v2390_v19  ;;  %v2550_v60 = vcvt.s32.f32 %v551_v61  ;;  %v2552_v0 = vcvt.s32.f32 %v552_v21  ;;  %v636_v61 = vld [vmem:[%s2333_s18 + $0x88] sm:$0xff]  ;;  %v637_v21 = vld [vmem:[%s2333_s18 + $0x90] sm:$0xff] }
  0x9d   : > { %1813 = vpow2.f32 %v927_v58  ;;  %v2554_v24 = vmul.f32 1.442695, %v873_v34  ;;  %v2556_v1 = vcvt.s32.f32 %v553_v45  ;;  %v2558_v2 = vcvt.s32.f32 %v554_v62 }
  0x9e   : > { %3541 = vst [vmem:[#allocation44_spill] sm:$0xff] %v2550_v60  ;;  %3542 = vst [vmem:[#allocation45_spill] sm:$0xff] %v2552_v0  ;;  %1815 = vpow2.f32 %v929_v39  ;;  %v2560_v3 = vcvt.s32.f32 %v555_v63  ;;  %v2562_v10 = vcvt.s32.f32 %v556_v50  ;;  %v1300_v11 = vadd.f32 %v2552_v0, %v2550_v60  ;;  %v635_v39 = vld [vmem:[%s2333_s18 + $0x80] sm:$0xff] }
  0x9f   : > { %3543 = vst [vmem:[#allocation46_spill] sm:$0xff] %v2556_v1  ;;  %3544 = vst [vmem:[#allocation47_spill] sm:$0xff] %v2558_v2  ;;  %1817 = vpow2.f32 %v931_v43  ;;  %v2568_v15 = vcvt.s32.f32 %v557_v55  ;;  %v567_v16 = vunpack.c.2.s8 %v2362_v5  ;;  %v568_v20 = vunpack.c.2.s8 %v2365_v6 }
  0xa0   : > { %3545 = vst [vmem:[#allocation48_spill] sm:$0xff] %v2560_v3  ;;  %3546 = vst [vmem:[#allocation49_spill] sm:$0xff] %v2562_v10  ;;  %v2566_v12 = vpop.eup %1793  ;;  %v569_v33 = vunpack.c.2.s8 %v2368_v7  ;;  %v2575_v56 = vcvt.s32.f32 %v558_v59  ;;  %v1301_v34 = vadd.f32 %v1300_v11, %v2556_v1  ;;  %v570_v35 = vunpack.c.2.s8 %v2371_v8  ;;  %v638_v8 = vld [vmem:[%s2333_s18 + $0x98] sm:$0xff] }
  0xa1   : > { %3547 = vst [vmem:[#allocation50_spill] sm:$0xff] %v2566_v12  ;;  %3548 = vst [vmem:[#allocation51_spill] sm:$0xff] %v2568_v15  ;;  %v2573_v52 = vpop.eup %1795  ;;  %v571_v58 = vunpack.c.2.s8 %v2374_v9  ;;  %1819 = vpow2.f32 %v933_v46  ;;  %v572_v6 = vunpack.c.2.s8 %v2380_v13  ;;  %v573_v7 = vunpack.c.2.s8 %v2383_v14  ;;  %v639_v13 = vld [vmem:[%s2333_s18 + $0xa0] sm:$0xff]  ;;  %v640_v14 = vld [vmem:[%s2333_s18 + $0xa8] sm:$0xff] }
  0xa2   : > { %3549 = vst [vmem:[#allocation52_spill] sm:$0xff] %v2573_v52  ;;  %3550 = vst [vmem:[#allocation53_spill] sm:$0xff] %v2575_v56  ;;  %v2581_v5 = vpop.eup %1797  ;;  %v574_v43 = vunpack.c.2.s8 %v2390_v19  ;;  %v1302_v9 = vadd.f32 %v1301_v34, %v2558_v2  ;;  %v2592_v62 = vcvt.s32.f32 %v567_v16  ;;  %v2594_v63 = vcvt.s32.f32 %v568_v20  ;;  %v641_v19 = vld [vmem:[%s2333_s18 + $0xb0] sm:$0xff]  ;;  %v642_v20 = vld [vmem:[%s2333_s18 + $0xb8] sm:$0xff] }
  0xa3   : > { %3551 = vst [vmem:[#allocation54_spill] sm:$0xff] %v2581_v5  ;;  %v2589_v45 = vpop.eup %1799  ;;  %v2596_v46 = vcvt.s32.f32 %v569_v33  ;;  %v2603_v55 = vcvt.s32.f32 %v570_v35  ;;  %v2605_v59 = vcvt.s32.f32 %v571_v58  ;;  %v2607_v11 = vcvt.s32.f32 %v572_v6  ;;  %v2613_v33 = vld [vmem:[%s2319_s29 + $0x80] sm:$0xff]  ;;  %v2616_v34 = vld [vmem:[%s2319_s29 + $0x88] sm:$0xff]  ;;  %v2626_v58 = vld [vmem:[%s2319_s29 + $0x90] sm:$0xff] }
  0xa4   : > { %3552 = vst [vmem:[#allocation55_spill] sm:$0xff] %v2589_v45  ;;  %3553 = vst [vmem:[#allocation56_spill] sm:$0xff] %v2592_v62  ;;  %v2601_v50 = vpop.eup %1801  ;;  %v2609_v16 = vcvt.s32.f32 %v573_v7  ;;  %v1303_v53 = vadd.f32 %v1302_v9, %v2560_v3  ;;  %v2621_v49 = vcvt.s32.f32 %v574_v43  ;;  %v1318_v35 = vadd.f32 %v2594_v63, %v2592_v62  ;;  %v2629_v6 = vld [vmem:[%s2319_s29 + $0x98] sm:$0xff]  ;;  %v2632_v7 = vld [vmem:[%s2319_s29 + $0xa0] sm:$0xff] }
  0xa5   : > { %3554 = vst [vmem:[#allocation57_spill] sm:$0xff] %v2594_v63  ;;  %3555 = vst [vmem:[#allocation58_spill] sm:$0xff] %v2596_v46  ;;  %v2618_v54 = vpop.eup %1803  ;;  %v667_v48 = vsub.f32 %v635_v39, %v2613_v33  ;;  %v2642_v43 = vld [vmem:[%s2319_s29 + $0xb0] sm:$0xff]  ;;  %v668_v9 = vsub.f32 %v636_v61, %v2616_v34  ;;  %v669_v41 = vsub.f32 %v637_v21, %v2626_v58  ;;  %1821 = vpow2.f32 %v2554_v24  ;;  %v626_v12 = vld [vmem:[%s2333_s18 + $0x38] sm:$0xff] }
  0xa6   : > { %3556 = vst [vmem:[#allocation59_spill] sm:$0xff] %v2601_v50  ;;  %3557 = vst [vmem:[#allocation60_spill] sm:$0xff] %v2603_v55  ;;  %v2635_v47 = vpop.eup %1805  ;;  %1316 = vadd.xlane.f32.xlu0 %v2535_v38  ;;  %v670_v40 = vsub.f32 %v638_v8, %v2629_v6  ;;  %v671_v51 = vsub.f32 %v639_v13, %v2632_v7  ;;  %v1304_v39 = vadd.f32 %v1303_v53, %v2562_v10  ;;  %v619_v50 = vld [vmem:[%s2333_s18] sm:$0xff]  ;;  %v625_v52 = vld [vmem:[%s2333_s18 + $0x30] sm:$0xff] }
  0xa7   : > { %3558 = vst [vmem:[#allocation61_spill] sm:$0xff] %v2605_v59  ;;  %3559 = vst [vmem:[#allocation62_spill] sm:$0xff] %v2607_v11  ;;  %v2648_v37 = vpop.eup %1807  ;;  %v1319_v36 = vadd.f32 %v1318_v35, %v2596_v46  ;;  %v672_v38 = vsub.f32 %v640_v14, %v2639_v42  ;;  %v673_v23 = vsub.f32 %v641_v19, %v2642_v43 }
  0xa8   : > { %3560 = vst [vmem:[#allocation63_spill] sm:$0xff] %v2609_v16  ;;  %3561 = vst [vmem:[#allocation64_spill] sm:$0xff] %v2618_v54  ;;  %v2657_v22 = vpop.eup %1809  ;;  %v674_v61 = vsub.f32 %v642_v20, %v2653_v31  ;;  %v2661_v21 = vmul.f32 %v667_v48, %v2592_v62  ;;  %v2664_v8 = vmul.f32 %v668_v9, %v2594_v63  ;;  %v529_v63 = vld [vmem:[%s2327_s15 + $0x90] sm:$0xff]  ;;  %v531_v62 = vld [vmem:[%s2327_s15 + $0xa0] sm:$0xff] }
  0xa9   : > { %3562 = vst [vmem:[#allocation65_spill] sm:$0xff] %v2621_v49  ;;  %3563 = vst [vmem:[#allocation66_spill] sm:$0xff] %v2635_v47  ;;  %v2667_v53 = vmul.f32 %v669_v41, %v2596_v46  ;;  %v2669_v13 = vpop.eup %1811  ;;  %v1305_v14 = vadd.f32 %v1304_v39, %v2568_v15  ;;  %v1320_v19 = vadd.f32 %v1319_v36, %v2603_v55  ;;  %v528_v46 = vld [vmem:[%s2327_s15 + $0x88] sm:$0xff] }
  0xaa   : > { %3564 = vst [vmem:[#allocation67_spill] sm:$0xff] %v2648_v37  ;;  %3565 = vst [vmem:[#allocation68_spill] sm:$0xff] %v2657_v22  ;;  %v2674_v35 = vmul.f32 %v670_v40, %v2603_v55  ;;  %v2677_v48 = vmul.f32 %v671_v51, %v2605_v59  ;;  %v2679_v20 = vpop.eup %1813  ;;  %1334 = vadd.xlane.f32.xlu0 %v2540_v57  ;;  %v2684_v41 = vmul.f32 %v672_v38, %v2607_v11  ;;  %v527_v55 = vld [vmem:[%s2327_s15 + $0x80] sm:$0xff]  ;;  %v2749_v47 = vld [vmem:[%s2319_s29 + $0x68] sm:$0xff] }
  0xab   : > { %3566 = vst [vmem:[#allocation69_spill] sm:$0xff] %v2664_v8  ;;  %3567 = vst [vmem:[#allocation70_spill] sm:$0xff] %v2667_v53  ;;  %v2687_v36 = vmul.f32 %v673_v23, %v2609_v16  ;;  %v747_v40 = vmul.f32 1.442695, %v2661_v21  ;;  %v2690_v9 = vpop.eup %1815  ;;  %v1306_v51 = vadd.f32 %v1305_v14, %v2575_v56  ;;  %v1321_v39 = vadd.f32 %v1320_v19, %v2605_v59  ;;  %v530_v23 = vld [vmem:[%s2327_s15 + $0x98] sm:$0xff]  ;;  %v2722_v22 = vld [vmem:[%s2319_s29 + $0x40] sm:$0xff] }
  0xac   : > { %3568 = vst [vmem:[#allocation71_spill] sm:$0xff] %v2669_v13  ;;  %3569 = vst [vmem:[#allocation72_spill] sm:$0xff] %v2674_v35  ;;  %v749_v57 = vmul.f32 1.442695, %v2664_v8  ;;  %v751_v24 = vmul.f32 1.442695, %v2667_v53  ;;  %v2698_v38 = vpop.eup %1817  ;;  %v2704_v18 = vmul.f32 %v674_v61, %v2621_v49  ;;  %v863_v13 = vsub.f32 %v2632_v7, %v531_v62 }
  0xad   : > { %3570 = vst [vmem:[#allocation73_spill] sm:$0xff] %v2677_v48  ;;  %3571 = vst [vmem:[#allocation74_spill] sm:$0xff] %v2679_v20  ;;  %1823 = vpow2.f32 %v747_v40  ;;  %v753_v14 = vmul.f32 1.442695, %v2674_v35  ;;  %1307 = vadd.xlane.f32.xlu1 %v1306_v51  ;;  %v1322_v19 = vadd.f32 %v1321_v39, %v2607_v11  ;;  %v755_v59 = vmul.f32 1.442695, %v2677_v48 }
  0xae   : > { %3572 = vst [vmem:[#allocation75_spill] sm:$0xff] %v2684_v41  ;;  %3573 = vst [vmem:[#allocation76_spill] sm:$0xff] %v2687_v36  ;;  %1825 = vpow2.f32 %v749_v57  ;;  %v759_v61 = vmul.f32 1.442695, %v2687_v36  ;;  %v859_v40 = vsub.f32 %v2613_v33, %v527_v55  ;;  %v860_v51 = vsub.f32 %v2616_v34, %v528_v46  ;;  %v2714_v20 = vpop.eup %1819  ;;  %v542_v39 = vld [vmem:[%s2327_s15 + $0xf8] sm:$0xff]  ;;  %v2725_v55 = vld [vmem:[%s2319_s29 + $0x48] sm:$0xff] }
  0xaf   : > { %3574 = vst [vmem:[#allocation77_spill] sm:$0xff] %v2690_v9  ;;  %3575 = vst [vmem:[#allocation78_spill] sm:$0xff] %v2698_v38  ;;  %v757_v38 = vmul.f32 1.442695, %v2684_v41  ;;  %v532_v9 = vld [vmem:[%s2327_s15 + $0xa8] sm:$0xff]  ;;  %1827 = vpow2.f32 %v751_v24  ;;  %v1323_v57 = vadd.f32 %v1322_v19, %v2609_v16  ;;  %v861_v11 = vsub.f32 %v2626_v58, %v529_v63  ;;  %v627_v33 = vld [vmem:[%s2333_s18 + $0x40] sm:$0xff] }
  0xb0   : > { %3576 = vst [vmem:[#allocation79_spill] sm:$0xff] %v2704_v18  ;;  %3577 = vst [vmem:[#allocation80_spill] sm:$0xff] %v2714_v20  ;;  %v862_v24 = vsub.f32 %v2629_v6, %v530_v23  ;;  %1829 = vpow2.f32 %v753_v14  ;;  %v761_v46 = vmul.f32 1.442695, %v2704_v18  ;;  %v628_v34 = vld [vmem:[%s2333_s18 + $0x48] sm:$0xff]  ;;  %v629_v19 = vld [vmem:[%s2333_s18 + $0x50] sm:$0xff]  ;;  %v864_v63 = vsub.f32 %v2639_v42, %v532_v9 }
  0xb1   : > { %v1324_v16 = vadd.f32 %v1323_v57, %v2621_v49  ;;  %1831 = vpow2.f32 %v755_v59  ;;  %v2734_v58 = vld [vmem:[%s2319_s29 + $0x50] sm:$0xff]  ;;  %v630_v62 = vld [vmem:[%s2333_s18 + $0x58] sm:$0xff]  ;;  %v631_v6 = vld [vmem:[%s2333_s18 + $0x60] sm:$0xff]  ;;  %v874_v23 = vsub.f32 %v2471_v4, %v542_v39  ;;  %v907_v14 = vmul.f32 1.442695, %v859_v40 }
  0xb2   : > { %v632_v7 = vld [vmem:[%s2333_s18 + $0x68] sm:$0xff]  ;;  %1833 = vpow2.f32 %v757_v38  ;;  %v909_v20 = vmul.f32 1.442695, %v860_v51  ;;  %v634_v57 = vld [vmem:[%s2333_s18 + $0x78] sm:$0xff]  ;;  %v911_v42 = vmul.f32 1.442695, %v861_v11  ;;  %v659_v4 = vsub.f32 %v627_v33, %v2722_v22 }
  0xb3   : > { %1325 = vadd.xlane.f32.xlu1 %v1324_v16  ;;  %1835 = vpow2.f32 %v759_v61  ;;  %v913_v59 = vmul.f32 1.442695, %v862_v24  ;;  %v915_v9 = vmul.f32 1.442695, %v863_v13  ;;  %v2743_v49 = vld [vmem:[%s2319_s29 + $0x58] sm:$0xff]  ;;  %v2746_v37 = vld [vmem:[%s2319_s29 + $0x60] sm:$0xff]  ;;  %v660_v38 = vsub.f32 %v628_v34, %v2725_v55  ;;  %v2768_v34 = vpop.eup %1821 }
  0xb4   : > { %1837 = vpow2.f32 %v761_v46  ;;  %v661_v40 = vsub.f32 %v629_v19, %v2734_v58  ;;  %v917_v51 = vmul.f32 1.442695, %v864_v63  ;;  %v2755_v16 = vld [vmem:[%s2319_s29 + $0x70] sm:$0xff]  ;;  %v2758_v11 = vld [vmem:[%s2319_s29 + $0x78] sm:$0xff]  ;;  %v662_v13 = vsub.f32 %v630_v62, %v2743_v49  ;;  %3578 = vst [vmem:[#allocation81_spill] sm:$0xff] %v2768_v34  ;;  %v2845_v34 = vld [vmem:[%s2319_s29 + $0x8] sm:$0xff] }
  0xb5   : > { %v663_v61 = vsub.f32 %v631_v6, %v2746_v37  ;;  %v664_v39 = vsub.f32 %v632_v7, %v2749_v47  ;;  %1839 = vpow2.f32 %v907_v14  ;;  %v665_v24 = vsub.f32 %v633_v17, %v2755_v16  ;;  %v2782_v6 = vld [vmem:[%s2327_s15 + $0xb0] sm:$0xff]  ;;  %v519_v7 = vld [vmem:[%s2327_s15 + $0x40] sm:$0xff]  ;;  %v2875_v35 = vld [vmem:[%s2319_s29 + $0x28] sm:$0xff] }
  0xb6   : > { %v666_v46 = vsub.f32 %v634_v57, %v2758_v11  ;;  %v2766_v33 = vmul.f32 %v659_v4, %v2397_v25  ;;  %1841 = vpow2.f32 %v909_v20  ;;  %v2771_v19 = vmul.f32 %v660_v38, %v2399_v26  ;;  %v520_v57 = vld [vmem:[%s2327_s15 + $0x48] sm:$0xff]  ;;  %v521_v4 = vld [vmem:[%s2327_s15 + $0x50] sm:$0xff] }
  0xb7   : > { %v2774_v63 = vmul.f32 %v661_v40, %v2401_v27  ;;  %v2777_v62 = vmul.f32 %v662_v13, %v2403_v28  ;;  %v2779_v17 = vmul.f32 1.442695, %v874_v23  ;;  %1843 = vpow2.f32 %v911_v42  ;;  %v2800_v13 = vld [vmem:[%s2327_s15 + $0xb8] sm:$0xff]  ;;  %v523_v27 = vld [vmem:[%s2327_s15 + $0x60] sm:$0xff]  ;;  %v2819_v26 = vld [vmem:[%s2327_s15 + $0x70] sm:$0xff] }
  0xb8   : > { %v2786_v14 = vmul.f32 %v663_v61, %v2405_v29  ;;  %1845 = vpow2.f32 %v913_v59  ;;  %v2793_v38 = vmul.f32 %v664_v39, %v2407_v30  ;;  %v731_v23 = vmul.f32 1.442695, %v2766_v33  ;;  %v522_v61 = vld [vmem:[%s2327_s15 + $0x58] sm:$0xff] }
  0xb9   : > { %v733_v40 = vmul.f32 1.442695, %v2771_v19  ;;  %1847 = vpow2.f32 %v915_v9  ;;  %v2804_v59 = vmul.f32 %v665_v24, %v2494_v32  ;;  %v2807_v29 = vmul.f32 %v666_v46, %v2511_v44  ;;  %v524_v32 = vld [vmem:[%s2327_s15 + $0x68] sm:$0xff]  ;;  %v2822_v46 = vld [vmem:[%s2327_s15 + $0x78] sm:$0xff] }
  0xba   : > { %v2788_v20 = vpop.eup %1823  ;;  %v735_v39 = vmul.f32 1.442695, %v2774_v63  ;;  %1849 = vpow2.f32 %v917_v51  ;;  %v737_v9 = vmul.f32 1.442695, %v2777_v62  ;;  %v739_v24 = vmul.f32 1.442695, %v2786_v14 }
  0xbb   : > { %v2797_v42 = vpop.eup %1825  ;;  %1851 = vpow2.f32 %v731_v23  ;;  %v851_v44 = vsub.f32 %v2722_v22, %v519_v7  ;;  %v852_v28 = vsub.f32 %v2725_v55, %v520_v57  ;;  %v853_v51 = vsub.f32 %v2734_v58, %v521_v4  ;;  %v620_v22 = vld [vmem:[%s2333_s18 + $0x8] sm:$0xff]  ;;  %v621_v7 = vld [vmem:[%s2333_s18 + $0x10] sm:$0xff] }
  0xbc   : > { %v2810_v30 = vpop.eup %1827  ;;  %1853 = vpow2.f32 %v733_v40  ;;  %v741_v54 = vmul.f32 1.442695, %v2793_v38  ;;  %v854_v23 = vsub.f32 %v2743_v49, %v522_v61  ;;  %v743_v58 = vmul.f32 1.442695, %v2804_v59  ;;  %v2842_v40 = vld [vmem:[%s2319_s29] sm:$0xff]  ;;  %v622_v49 = vld [vmem:[%s2333_s18 + $0x18] sm:$0xff] }
  0xbd   : > { %v2827_v25 = vpop.eup %1829  ;;  %1855 = vpow2.f32 %v735_v39  ;;  %v745_v57 = vmul.f32 1.442695, %v2807_v29  ;;  %v855_v4 = vsub.f32 %v2746_v37, %v523_v27  ;;  %v623_v61 = vld [vmem:[%s2333_s18 + $0x20] sm:$0xff]  ;;  %v856_v5 = vsub.f32 %v2749_v47, %v524_v32  ;;  %v624_v37 = vld [vmem:[%s2333_s18 + $0x28] sm:$0xff] }
  0xbe   : > { %v2836_v55 = vpop.eup %1831  ;;  %1857 = vpow2.f32 %v737_v9  ;;  %v857_v39 = vsub.f32 %v2755_v16, %v2819_v26  ;;  %v858_v27 = vsub.f32 %v2758_v11, %v2822_v46  ;;  %v891_v9 = vmul.f32 1.442695, %v851_v44  ;;  %v2864_v26 = vld [vmem:[%s2319_s29 + $0x10] sm:$0xff]  ;;  %v2867_v16 = vld [vmem:[%s2319_s29 + $0x18] sm:$0xff]  ;;  %v2870_v11 = vld [vmem:[%s2319_s29 + $0x20] sm:$0xff] }
  0xbf   : > { %v2849_v45 = vpop.eup %1833  ;;  %1859 = vpow2.f32 %v739_v24  ;;  %v893_v36 = vmul.f32 1.442695, %v852_v28  ;;  %v895_v41 = vmul.f32 1.442695, %v853_v51  ;;  %v897_v32 = vmul.f32 1.442695, %v854_v23 }
  0xc0   : > { %v2859_v18 = vpop.eup %1835  ;;  %1861 = vpow2.f32 %v741_v54  ;;  %v651_v46 = vsub.f32 %v619_v50, %v2842_v40  ;;  %v652_v48 = vsub.f32 %v620_v22, %v2845_v34  ;;  %v2878_v44 = vld [vmem:[%s2319_s29 + $0x30] sm:$0xff]  ;;  %v2881_v28 = vld [vmem:[%s2319_s29 + $0x38] sm:$0xff]  ;;  %v653_v54 = vsub.f32 %v621_v7, %v2864_v26 }
  0xc1   : > { %v2861_v47 = vpop.eup %1837  ;;  %1863 = vpow2.f32 %v743_v58  ;;  %v654_v24 = vsub.f32 %v622_v49, %v2867_v16  ;;  %v655_v51 = vsub.f32 %v623_v61, %v2870_v11  ;;  %v656_v50 = vsub.f32 %v624_v37, %v2875_v35 }
  0xc2   : > { %3579 = vst [vmem:[#allocation82_spill] sm:$0xff] %v2861_v47  ;;  %v2886_v23 = vpop.eup %1839  ;;  %1865 = vpow2.f32 %v745_v57  ;;  %v657_v22 = vsub.f32 %v625_v52, %v2878_v44  ;;  %v658_v58 = vsub.f32 %v626_v12, %v2881_v28  ;;  %v899_v8 = vmul.f32 1.442695, %v855_v4 }
  0xc3   : > { %3580 = vst [vmem:[#allocation83_spill] sm:$0xff] %v2886_v23  ;;  %v2891_v53 = vpop.eup %1841  ;;  %1867 = vpow2.f32 %v891_v9  ;;  %v901_v47 = vmul.f32 1.442695, %v856_v5  ;;  %v2894_v7 = vmul.f32 %v651_v46, %v2550_v60  ;;  %v2899_v57 = vmul.f32 %v652_v48, %v2552_v0  ;;  %v2918_v9 = vld [vmem:[%s2327_s15] sm:$0xff] }
  0xc4   : > { %3581 = vst [vmem:[#allocation84_spill] sm:$0xff] %v2891_v53  ;;  %v2896_v49 = vpop.eup %1843  ;;  %1869 = vpow2.f32 %v893_v36  ;;  %v2902_v61 = vmul.f32 %v653_v54, %v2556_v1  ;;  %v2905_v12 = vmul.f32 %v654_v24, %v2558_v2  ;;  %v903_v5 = vmul.f32 1.442695, %v857_v39  ;;  %v518_v53 = vld [vmem:[%s2327_s15 + $0x38] sm:$0xff] }
  0xc5   : > { %3582 = vst [vmem:[#allocation85_spill] sm:$0xff] %v2896_v49  ;;  %v2907_v52 = vpop.eup %1845  ;;  %1871 = vpow2.f32 %v895_v41  ;;  %v2910_v4 = vmul.f32 %v655_v51, %v2560_v3  ;;  %v2913_v37 = vmul.f32 %v656_v50, %v2562_v10  ;;  %v905_v48 = vmul.f32 1.442695, %v858_v27  ;;  %v2939_v51 = vld [vmem:[%s2327_s15 + $0x8] sm:$0xff] }
  0xc6   : > { %3583 = vst [vmem:[#allocation86_spill] sm:$0xff] %v2907_v52  ;;  %v2915_v36 = vpop.eup %1847  ;;  %1873 = vpow2.f32 %v897_v32  ;;  %v2921_v46 = vmul.f32 %v657_v22, %v2568_v15  ;;  %v2924_v54 = vmul.f32 %v658_v58, %v2575_v56  ;;  %v3586_v39 = vsub.f32 %v2642_v43, %v2782_v6 }
  0xc7   : > { %3584 = vst [vmem:[#allocation87_spill] sm:$0xff] %v2915_v36  ;;  %v2926_v41 = vpop.eup %1849  ;;  %v3587_v32 = vsub.f32 %v2653_v31, %v2800_v13  ;;  %1875 = vpow2.f32 %v899_v8  ;;  %v715_v50 = vmul.f32 1.442695, %v2894_v7  ;;  %v717_v58 = vmul.f32 1.442695, %v2899_v57  ;;  %v513_v31 = vld [vmem:[%s2327_s15 + $0x10] sm:$0xff] }
  0xc8   : > { %3585 = vst [vmem:[#allocation88_spill] sm:$0xff] %v2926_v41  ;;  %v2931_v24 = vmul.f32 1.442695, %v3586_v39  ;;  %v1852_v22 = vpop.eup %1851  ;;  %1877 = vpow2.f32 %v901_v47  ;;  %v719_v56 = vmul.f32 1.442695, %v2902_v61  ;;  %v514_v47 = vld [vmem:[%s2327_s15 + $0x18] sm:$0xff]  ;;  %v843_v0 = vsub.f32 %v2842_v40, %v2918_v9 }
  0xc9   : > { %v2936_v27 = vmul.f32 1.442695, %v3587_v32  ;;  %v721_v43 = vmul.f32 1.442695, %v2905_v12  ;;  %v1854_v6 = vpop.eup %1853  ;;  %v1670_v39 = vadd.f32 -1.0, %v1852_v22  ;;  %1879 = vpow2.f32 %v903_v5  ;;  %v515_v22 = vld [vmem:[%s2327_s15 + $0x20] sm:$0xff] }
  0xca   : > { %v723_v8 = vmul.f32 1.442695, %v2910_v4  ;;  %v725_v13 = vmul.f32 1.442695, %v2913_v37  ;;  %v1856_v32 = vpop.eup %1855  ;;  %v1671_v15 = vadd.f32 -1.0, %v1854_v6  ;;  %1881 = vpow2.f32 %v905_v48  ;;  %v516_v48 = vld [vmem:[%s2327_s15 + $0x28] sm:$0xff] }
  0xcb   : > { %v727_v10 = vmul.f32 1.442695, %v2921_v46  ;;  %v729_v3 = vmul.f32 1.442695, %v2924_v54  ;;  %v1858_v2 = vpop.eup %1857  ;;  %v1672_v1 = vadd.f32 -1.0, %v1856_v32  ;;  %v819_v5 = vsub.f32 %v1670_v39, %v2766_v33  ;;  %v517_v36 = vld [vmem:[%s2327_s15 + $0x30] sm:$0xff] }
  0xcc   : > { %1883 = vpow2.f32 %v715_v50  ;;  %v1860_v60 = vpop.eup %1859  ;;  %v1673_v41 = vadd.f32 -1.0, %v1858_v2  ;;  %v820_v6 = vsub.f32 %v1671_v15, %v2771_v19  ;;  %v844_v52 = vsub.f32 %v2845_v34, %v2939_v51 }
  0xcd   : > { %1885 = vpow2.f32 %v717_v58  ;;  %v1862_v49 = vpop.eup %1861  ;;  %v821_v32 = vsub.f32 %v1672_v1, %v2774_v63  ;;  %v845_v33 = vsub.f32 %v2864_v26, %v513_v31  ;;  %v846_v50 = vsub.f32 %v2867_v16, %v514_v47 }
  0xce   : > { %1887 = vpow2.f32 %v719_v56  ;;  %v1864_v40 = vpop.eup %1863  ;;  %v1674_v9 = vadd.f32 -1.0, %v1860_v60  ;;  %v1675_v2 = vadd.f32 -1.0, %v1862_v49  ;;  %v1357_v39 = vadd.f32 %v820_v6, %v819_v5 }
  0xcf   : > { %v847_v15 = vsub.f32 %v2870_v11, %v515_v22  ;;  %v1866_v19 = vpop.eup %1865  ;;  %v1676_v58 = vadd.f32 -1.0, %v1864_v40  ;;  %1889 = vpow2.f32 %v721_v43  ;;  %v848_v34 = vsub.f32 %v2875_v35, %v516_v48 }
  0xd0   : > { %v849_v51 = vsub.f32 %v2878_v44, %v517_v36  ;;  %v2967_v1 = vpop.eup %1867  ;;  %v1677_v56 = vadd.f32 -1.0, %v1866_v19  ;;  %v822_v63 = vsub.f32 %v1673_v41, %v2777_v62  ;;  %v1358_v26 = vadd.f32 %v1357_v39, %v821_v32 }
  0xd1   : > { %v850_v16 = vsub.f32 %v2881_v28, %v518_v53  ;;  %v2971_v60 = vpop.eup %1869  ;;  %v2973_v49 = vmul.f32 0.01, %v820_v6  ;;  %v2975_v11 = vmul.f32 0.01, %v819_v5  ;;  %1891 = vpow2.f32 %v723_v8 }
  0xd2   : > { %v875_v43 = vmul.f32 1.442695, %v843_v0  ;;  %v2977_v31 = vpop.eup %1871  ;;  %v823_v35 = vsub.f32 %v1674_v9, %v2786_v14  ;;  %v824_v44 = vsub.f32 %v1675_v2, %v2793_v38  ;;  %v1359_v36 = vadd.f32 %v1358_v26, %v822_v63 }
  0xd3   : > { %3588 = vst [vmem:[#allocation89_spill] sm:$0xff] %v2973_v49  ;;  %3589 = vst [vmem:[#allocation90_spill] sm:$0xff] %v2975_v11  ;;  %1893 = vpow2.f32 %v725_v13  ;;  %v2981_v62 = vpop.eup %1873  ;;  %v825_v53 = vsub.f32 %v1676_v58, %v2804_v59  ;;  %v877_v28 = vmul.f32 1.442695, %v844_v52  ;;  %v879_v41 = vmul.f32 1.442695, %v845_v33 }
  0xd4   : > { %1895 = vpow2.f32 %v727_v10  ;;  %v2984_v47 = vpop.eup %1875  ;;  %v826_v8 = vsub.f32 %v1677_v56, %v2807_v29  ;;  %v1360_v0 = vadd.f32 %v1359_v36, %v823_v35  ;;  %v881_v5 = vmul.f32 1.442695, %v846_v50  ;;  %v3611_v49 = vld [vmem:[#allocation85_spill] sm:$0xff] }
  0xd5   : > { %1897 = vpow2.f32 %v729_v3  ;;  %v2987_v22 = vpop.eup %1877  ;;  %v2989_v14 = vmul.f32 0.01, %v821_v32  ;;  %v2991_v38 = vmul.f32 0.01, %v822_v63  ;;  %v883_v13 = vmul.f32 1.442695, %v847_v15 }
  0xd6   : > { %1899 = vpow2.f32 %v875_v43  ;;  %v2993_v6 = vpop.eup %1879  ;;  %v2995_v10 = vmul.f32 0.01, %v823_v35  ;;  %v1361_v59 = vadd.f32 %v1360_v0, %v824_v44  ;;  %v885_v52 = vmul.f32 1.442695, %v848_v34 }
  0xd7   : > { %3590 = vst [vmem:[#allocation91_spill] sm:$0xff] %v2989_v14  ;;  %3591 = vst [vmem:[#allocation92_spill] sm:$0xff] %v2991_v38  ;;  %1901 = vpow2.f32 %v877_v28  ;;  %v2997_v48 = vpop.eup %1881  ;;  %v2999_v29 = vmul.f32 0.01, %v824_v44  ;;  %v3001_v3 = vmul.f32 0.01, %v825_v53 }
  0xd8   : > { %3592 = vst [vmem:[#allocation93_spill] sm:$0xff] %v2995_v10  ;;  %3593 = vst [vmem:[#allocation94_spill] sm:$0xff] %v2997_v48  ;;  %1903 = vpow2.f32 %v879_v41  ;;  %v887_v32 = vmul.f32 1.442695, %v849_v51  ;;  %v3003_v50 = vmul.f32 0.01, %v826_v8  ;;  %v1362_v40 = vadd.f32 %v1361_v59, %v825_v53 }
  0xd9   : > { %3594 = vst [vmem:[#allocation95_spill] sm:$0xff] %v2999_v29  ;;  %3595 = vst [vmem:[#allocation96_spill] sm:$0xff] %v3001_v3  ;;  %v1884_v33 = vpop.eup %1883  ;;  %1905 = vpow2.f32 %v881_v5  ;;  %v889_v9 = vmul.f32 1.442695, %v850_v16  ;;  %v999_v15 = vmax.f32 %v2967_v1, 0.8 }
  0xda   : > { %3596 = vst [vmem:[#allocation97_spill] sm:$0xff] %v3003_v50  ;;  %v1886_v2 = vpop.eup %1885  ;;  %v1662_v39 = vadd.f32 -1.0, %v1884_v33  ;;  %1907 = vpow2.f32 %v883_v13  ;;  %v1000_v19 = vmax.f32 %v2971_v60, 0.8  ;;  %v1363_v34 = vadd.f32 %v1362_v40, %v826_v8  ;;  %v3606_v10 = vld [vmem:[#allocation82_spill] sm:$0xff]  ;;  %v3607_v38 = vld [vmem:[#allocation69_spill] sm:$0xff] }
  0xdb   : > { %v1888_v58 = vpop.eup %1887  ;;  %v1663_v56 = vadd.f32 -1.0, %v1886_v2  ;;  %1909 = vpow2.f32 %v885_v52  ;;  %v1001_v63 = vmax.f32 %v2977_v31, 0.8  ;;  %v1002_v26 = vmax.f32 %v2981_v62, 0.8 }
  0xdc   : > { %v1664_v51 = vadd.f32 -1.0, %v1888_v58  ;;  %1911 = vpow2.f32 %v887_v32  ;;  %v1003_v43 = vmax.f32 %v2984_v47, 0.8  ;;  %v1890_v16 = vpop.eup %1889  ;;  %1364 = vadd.xlane.f32.xlu0 %v1363_v34  ;;  %v811_v35 = vsub.f32 %v1662_v39, %v2894_v7 }
  0xdd   : > { %v812_v44 = vsub.f32 %v1663_v56, %v2899_v57  ;;  %1913 = vpow2.f32 %v889_v9  ;;  %v1004_v36 = vmax.f32 %v2987_v22, 0.8  ;;  %v1665_v53 = vadd.f32 -1.0, %v1890_v16 }
  0xde   : > { %1915 = vpow2.f32 %v2931_v24  ;;  %v1005_v28 = vmax.f32 %v2993_v6, 0.8  ;;  %v1006_v41 = vmax.f32 %v2997_v48, 0.8  ;;  %v1892_v8 = vpop.eup %1891  ;;  %v813_v0 = vsub.f32 %v1664_v51, %v2902_v61 }
  0xdf   : > { %v1348_v5 = vadd.f32 %v812_v44, %v811_v35  ;;  %v3017_v13 = vmin.f32 %v999_v15, 1.2  ;;  %v3019_v59 = vmin.f32 %v1000_v19, 1.2  ;;  %1917 = vpow2.f32 %v2936_v27 }
  0xe0   : > { %v1894_v7 = vpop.eup %1893  ;;  %v1666_v57 = vadd.f32 -1.0, %v1892_v8  ;;  %v3022_v52 = vmin.f32 %v1001_v63, 1.2  ;;  %v3024_v24 = vmin.f32 %v1002_v26, 1.2  ;;  %v814_v40 = vsub.f32 %v1665_v53, %v2905_v12 }
  0xe1   : > { %3597 = vst [vmem:[#allocation98_spill] sm:$0xff] %v3017_v13  ;;  %3598 = vst [vmem:[#allocation99_spill] sm:$0xff] %v3019_v59  ;;  %v1896_v32 = vpop.eup %1895  ;;  %v1667_v33 = vadd.f32 -1.0, %v1894_v7  ;;  %v1349_v9 = vadd.f32 %v1348_v5, %v813_v0  ;;  %v3027_v2 = vmul.f32 0.01, %v811_v35  ;;  %1919 = vpow2.f32 %v2779_v17  ;;  %v3617_v59 = vld [vmem:[#allocation75_spill] sm:$0xff] }
  0xe2   : > { %3599 = vst [vmem:[#allocation100_spill] sm:$0xff] %v3022_v52  ;;  %3600 = vst [vmem:[#allocation101_spill] sm:$0xff] %v3024_v24  ;;  %v1898_v61 = vpop.eup %1897  ;;  %v1668_v39 = vadd.f32 -1.0, %v1896_v32  ;;  %v3030_v15 = vmul.f32 0.01, %v812_v44  ;;  %v815_v34 = vsub.f32 %v1666_v57, %v2910_v4  ;;  %v1678_v4 = vadd.f32 -1.0, %v2788_v20 }
  0xe3   : > { %v3032_v19 = vmin.f32 %v1003_v43, 1.2  ;;  %v3034_v27 = vpop.eup %1899  ;;  %v1669_v58 = vadd.f32 -1.0, %v1898_v61  ;;  %v1350_v56 = vadd.f32 %v1349_v9, %v814_v40  ;;  %v3037_v63 = vmin.f32 %v1004_v36, 1.2 }
  0xe4   : > { %v3039_v12 = vpop.eup %1901  ;;  %v816_v51 = vsub.f32 %v1667_v33, %v2913_v37  ;;  %v3042_v26 = vmul.f32 0.01, %v813_v0  ;;  %v3044_v17 = vmin.f32 %v1005_v28, 1.2  ;;  %v3046_v16 = vmin.f32 %v1006_v41, 1.2 }
  0xe5   : > { %3601 = vst [vmem:[#allocation102_spill] sm:$0xff] %v3032_v19  ;;  %3602 = vst [vmem:[#allocation103_spill] sm:$0xff] %v3037_v63  ;;  %v3048_v43 = vpop.eup %1903  ;;  %v817_v35 = vsub.f32 %v1668_v39, %v2921_v46  ;;  %v1351_v44 = vadd.f32 %v1350_v56, %v815_v34  ;;  %v1679_v36 = vadd.f32 -1.0, %v2797_v42  ;;  %v818_v8 = vsub.f32 %v1669_v58, %v2924_v54  ;;  %v3614_v63 = vld [vmem:[#allocation88_spill] sm:$0xff] }
  0xe6   : > { %3603 = vst [vmem:[#allocation104_spill] sm:$0xff] %v3044_v17  ;;  %3604 = vst [vmem:[#allocation105_spill] sm:$0xff] %v3046_v16  ;;  %v3053_v53 = vpop.eup %1905  ;;  %v3056_v37 = vmul.f32 0.01, %v814_v40  ;;  %v991_v28 = vmax.f32 %v3034_v27, 0.8 }
  0xe7   : > { %v992_v41 = vmax.f32 %v3039_v12, 0.8  ;;  %v3060_v0 = vpop.eup %1907  ;;  %v3062_v5 = vmul.f32 0.01, %v815_v34  ;;  %v1352_v46 = vadd.f32 %v1351_v44, %v816_v51  ;;  %v993_v7 = vmax.f32 %v3048_v43, 0.8 }
  0xe8   : > { %v1680_v20 = vadd.f32 -1.0, %v2810_v30  ;;  %v3066_v42 = vpop.eup %1909  ;;  %v3068_v57 = vmul.f32 0.01, %v816_v51  ;;  %v994_v54 = vmax.f32 %v3053_v53, 0.8  ;;  %v1681_v32 = vadd.f32 -1.0, %v2827_v25 }
  0xe9   : > { %v1682_v33 = vadd.f32 -1.0, %v2836_v55  ;;  %v3073_v40 = vpop.eup %1911  ;;  %v3075_v9 = vmul.f32 0.01, %v817_v35  ;;  %v1353_v61 = vadd.f32 %v1352_v46, %v817_v35  ;;  %v995_v39 = vmax.f32 %v3060_v0, 0.8  ;;  %v3615_v19 = vld [vmem:[#allocation72_spill] sm:$0xff] }
  0xea   : > { %v996_v58 = vmax.f32 %v3066_v42, 0.8  ;;  %v3079_v30 = vpop.eup %1913  ;;  %v3081_v34 = vmul.f32 0.01, %v818_v8  ;;  %v3083_v56 = vmin.f32 %v991_v28, 1.2  ;;  %v827_v25 = vsub.f32 %v1678_v4, %v2661_v21 }
  0xeb   : > { %v3085_v51 = vmin.f32 %v992_v41, 1.2  ;;  %v3088_v55 = vpop.eup %1915  ;;  %v1354_v44 = vadd.f32 %v1353_v61, %v818_v8  ;;  %v3090_v50 = vmin.f32 %v993_v7, 1.2  ;;  %v1683_v35 = vadd.f32 -1.0, %v2849_v45  ;;  %v3609_v45 = vld [vmem:[#allocation70_spill] sm:$0xff] }
  0xec   : > { %3605 = vst [vmem:[#allocation106_spill] sm:$0xff] %v3088_v55  ;;  %v1684_v46 = vadd.f32 -1.0, %v2859_v18  ;;  %v997_v3 = vmax.f32 %v3073_v40, 0.8  ;;  %v3095_v29 = vmin.f32 %v994_v54, 1.2  ;;  %v828_v41 = vsub.f32 %v1679_v36, %v3607_v38  ;;  %v3099_v14 = vpop.eup %1917 }
  0xed   : > { %v1685_v28 = vadd.f32 -1.0, %v3606_v10  ;;  %3608 = vst [vmem:[#allocation82_spill] sm:$0xff] %v3099_v14  ;;  %1355 = vadd.xlane.f32.xlu1 %v1354_v44  ;;  %v998_v21 = vmax.f32 %v3079_v30, 0.8  ;;  %v3102_v4 = vmin.f32 %v995_v39, 1.2  ;;  %v829_v7 = vsub.f32 %v1680_v20, %v3609_v45 }
  0xee   : > { %v3104_v8 = vmin.f32 %v996_v58, 1.2  ;;  %v1007_v18 = vmax.f32 %v2886_v23, 0.8  ;;  %v3610_v61 = vld [vmem:[#allocation84_spill] sm:$0xff]  ;;  %v1366_v10 = vadd.f32 %v828_v41, %v827_v25  ;;  %v3110_v16 = vpop.eup %1919  ;;  %v3612_v38 = vld [vmem:[#allocation86_spill] sm:$0xff]  ;;  %v830_v58 = vsub.f32 %v1681_v32, %v3615_v19 }
  0xef   : > { %v1008_v54 = vmax.f32 %v3610_v61, 0.8  ;;  %v1009_v11 = vmax.f32 %v3611_v49, 0.8  ;;  %v1010_v36 = vmax.f32 %v3612_v38, 0.8  ;;  %v832_v13 = vsub.f32 %v1683_v35, %v3617_v59 }
  0xf0   : > { %v3613_v44 = vld [vmem:[#allocation87_spill] sm:$0xff]  ;;  %v1012_v39 = vmax.f32 %v3614_v63, 0.8  ;;  %v1013_v24 = vmax.f32 %v3088_v55, 0.8  ;;  %v1367_v45 = vadd.f32 %v1366_v10, %v829_v7  ;;  %v3616_v49 = vld [vmem:[#allocation73_spill] sm:$0xff] }
  0xf1   : > { %v1011_v17 = vmax.f32 %v3613_v44, 0.8  ;;  %v1014_v20 = vmax.f32 %v3099_v14, 0.8  ;;  %v3118_v23 = vmin.f32 %v997_v3, 1.2  ;;  %v831_v52 = vsub.f32 %v1682_v33, %v3616_v49 }
  0xf2   : > { %v3120_v61 = vmin.f32 %v998_v21, 1.2  ;;  %v3124_v38 = vmin.f32 %v1007_v18, 1.2  ;;  %v3126_v44 = vmin.f32 %v1008_v54, 1.2  ;;  %v1368_v19 = vadd.f32 %v1367_v45, %v830_v58 }
  0xf3   : > { %v3128_v63 = vmin.f32 %v1009_v11, 1.2  ;;  %v3618_v32 = vld [vmem:[#allocation76_spill] sm:$0xff]  ;;  %v3131_v48 = vmin.f32 %v1010_v36, 1.2  ;;  %v3622_v21 = vld [vmem:[#allocation79_spill] sm:$0xff] }
  0xf4   : > { %v833_v55 = vsub.f32 %v1684_v46, %v3618_v32  ;;  %v3133_v10 = vmin.f32 %v1011_v17, 1.2  ;;  %v3135_v3 = vmin.f32 %v1012_v39, 1.2  ;;  %v3138_v14 = vsub.f32 %v1685_v28, %v3622_v21  ;;  %v3629_v46 = vld [vmem:[#allocation50_spill] sm:$0xff]  ;;  %v3633_v39 = vld [vmem:[#allocation52_spill] sm:$0xff] }
  0xf5   : > { %3619 = vst [vmem:[#allocation69_spill] sm:$0xff] %v3131_v48  ;;  %v3140_v49 = vmin.f32 %v1013_v24, 1.2  ;;  %v3142_v59 = vmin.f32 %v1014_v20, 1.2  ;;  %v1686_v18 = vadd.f32 -1.0, %v3629_v46  ;;  %v1369_v28 = vadd.f32 %v1368_v19, %v831_v52 }
  0xf6   : > { %3620 = vst [vmem:[#allocation70_spill] sm:$0xff] %v3133_v10  ;;  %3621 = vst [vmem:[#allocation72_spill] sm:$0xff] %v3135_v3  ;;  %v3144_v33 = vmul.f32 0.01, %v827_v25  ;;  %v3146_v11 = vmul.f32 0.01, %v828_v41 }
  0xf7   : > { %3623 = vst [vmem:[#allocation73_spill] sm:$0xff] %v3138_v14  ;;  %3624 = vst [vmem:[#allocation75_spill] sm:$0xff] %v3140_v49  ;;  %v3148_v35 = vmul.f32 0.01, %v829_v7  ;;  %v3151_v54 = vmul.f32 0.01, %v830_v58  ;;  %v1370_v3 = vadd.f32 %v1369_v28, %v832_v13 }
  0xf8   : > { %3625 = vst [vmem:[#allocation76_spill] sm:$0xff] %v3142_v59  ;;  %3626 = vst [vmem:[#allocation79_spill] sm:$0xff] %v3144_v33  ;;  %v3153_v17 = vmul.f32 0.01, %v831_v52  ;;  %v3155_v36 = vmul.f32 0.01, %v832_v13 }
  0xf9   : > { %3627 = vst [vmem:[#allocation107_spill] sm:$0xff] %v3146_v11  ;;  %3628 = vst [vmem:[#allocation108_spill] sm:$0xff] %v3148_v35  ;;  %v1687_v24 = vadd.f32 -1.0, %v3633_v39  ;;  %v3634_v45 = vld [vmem:[#allocation54_spill] sm:$0xff]  ;;  %v3635_v32 = vld [vmem:[#allocation55_spill] sm:$0xff] }
  0xfa   : > { %3630 = vst [vmem:[#allocation50_spill] sm:$0xff] %v3151_v54  ;;  %3631 = vst [vmem:[#allocation109_spill] sm:$0xff] %v3153_v17  ;;  %v1688_v20 = vadd.f32 -1.0, %v3634_v45  ;;  %v1689_v25 = vadd.f32 -1.0, %v3635_v32  ;;  %v3636_v21 = vld [vmem:[#allocation59_spill] sm:$0xff]  ;;  %v3639_v58 = vld [vmem:[#allocation64_spill] sm:$0xff] }
  0xfb   : > { %3632 = vst [vmem:[#allocation110_spill] sm:$0xff] %v3155_v36  ;;  %v1690_v41 = vadd.f32 -1.0, %v3636_v21  ;;  %v3161_v11 = vmul.f32 0.01, %v833_v55  ;;  %v3164_v7 = vmul.f32 0.01, %v3138_v14 }
  0xfc   : > { %v1691_v46 = vadd.f32 -1.0, %v3639_v58  ;;  %v3640_v54 = vld [vmem:[#allocation66_spill] sm:$0xff]  ;;  %v3641_v35 = vld [vmem:[#allocation67_spill] sm:$0xff]  ;;  %v3644_v39 = vld [vmem:[#allocation68_spill] sm:$0xff] }
  0xfd   : > { %3637 = vst [vmem:[#allocation52_spill] sm:$0xff] %v3161_v11  ;;  %3638 = vst [vmem:[#allocation54_spill] sm:$0xff] %v3164_v7  ;;  %v1692_v17 = vadd.f32 -1.0, %v3640_v54  ;;  %v3169_v36 = vadd.f32 -1.0, %v3641_v35  ;;  %v3643_v52 = vld [vmem:[#allocation34_spill] sm:$0xff]  ;;  %v3645_v32 = vld [vmem:[#allocation71_spill] sm:$0xff] }
  0xfe   : > { %v3172_v19 = vsub.f32 %v1686_v18, %v3643_v52  ;;  %v1015_v45 = vmax.f32 %v3644_v39, 0.8  ;;  %v1016_v33 = vmax.f32 %v3645_v32, 0.8  ;;  %v3646_v21 = vld [vmem:[#allocation74_spill] sm:$0xff]  ;;  %v3647_v11 = vld [vmem:[#allocation77_spill] sm:$0xff] }
  0xff   : > { %3642 = vst [vmem:[#allocation55_spill] sm:$0xff] %v3169_v36  ;;  %v1017_v59 = vmax.f32 %v3646_v21, 0.8  ;;  %v1018_v49 = vmax.f32 %v3647_v11, 0.8  ;;  %v3648_v14 = vld [vmem:[#allocation78_spill] sm:$0xff] }
 0x100   : > { %v1019_v7 = vmax.f32 %v3648_v14, 0.8  ;;  %v3649_v58 = vld [vmem:[#allocation35_spill] sm:$0xff]  ;;  %v3651_v54 = vld [vmem:[#allocation36_spill] sm:$0xff]  ;;  %v3652_v36 = vld [vmem:[#allocation37_spill] sm:$0xff] }
 0x101   : > { %v3180_v10 = vsub.f32 %v1687_v24, %v3649_v58  ;;  %v3183_v35 = vsub.f32 %v1688_v20, %v3651_v54  ;;  %v3186_v18 = vsub.f32 %v1689_v25, %v3652_v36  ;;  %v3654_v52 = vld [vmem:[#allocation38_spill] sm:$0xff]  ;;  %v3656_v32 = vld [vmem:[#allocation40_spill] sm:$0xff]  ;;  %v3658_v21 = vld [vmem:[#allocation41_spill] sm:$0xff]  ;;  %v3200_v20 = vmin.f32 %v1015_v45, 1.2  ;;  %v942_v25 = vpop.permute.xlu0 %941 }
 0x102   : > { %v3189_v39 = vsub.f32 %v1690_v41, %v3654_v52  ;;  %v3192_v48 = vsub.f32 %v1691_v46, %v3656_v32  ;;  %v3195_v11 = vsub.f32 %v1692_v17, %v3658_v21  ;;  %v3660_v14 = vld [vmem:[#allocation80_spill] sm:$0xff]  ;;  %v3661_v28 = vld [vmem:[#allocation81_spill] sm:$0xff]  ;;  %v3202_v54 = vmin.f32 %v1016_v33, 1.2 }
 0x103   : > { %3650 = vst [vmem:[#allocation59_spill] sm:$0xff] %v3180_v10  ;;  %3653 = vst [vmem:[#allocation64_spill] sm:$0xff] %v3186_v18  ;;  %v3206_v36 = vadd.f32 %v3180_v10, %v3172_v19  ;;  %v3208_v41 = vmin.f32 %v1017_v59, 1.2  ;;  %v3210_v46 = vmin.f32 %v1018_v49, 1.2  ;;  %v3214_v32 = vadd.f32 %v1370_v3, %v833_v55 }
 0x104   : > { %3655 = vst [vmem:[#allocation66_spill] sm:$0xff] %v3189_v39  ;;  %3657 = vst [vmem:[#allocation67_spill] sm:$0xff] %v3192_v48  ;;  %v3212_v17 = vmin.f32 %v1019_v7, 1.2  ;;  %v959_v21 = vmul.f32 %v3034_v27, %v942_v25  ;;  %v960_v45 = vmul.f32 %v3039_v12, %v942_v25  ;;  %v961_v33 = vmul.f32 %v3048_v43, %v942_v25 }
 0x105   : > { %3659 = vst [vmem:[#allocation34_spill] sm:$0xff] %v3195_v11  ;;  %v962_v52 = vmul.f32 %v3053_v53, %v942_v25  ;;  %v963_v58 = vmul.f32 %v3060_v0, %v942_v25  ;;  %v964_v24 = vmul.f32 %v3066_v42, %v942_v25  ;;  %v965_v59 = vmul.f32 %v3073_v40, %v942_v25 }
 0x106   : > { %3662 = vst [vmem:[#allocation35_spill] sm:$0xff] %v3212_v17  ;;  %v966_v49 = vmul.f32 %v3079_v30, %v942_v25  ;;  %v1055_v7 = vmul.f32 %v3083_v56, %v942_v25  ;;  %v1056_v55 = vmul.f32 %v3085_v51, %v942_v25  ;;  %v1057_v27 = vmul.f32 %v3090_v50, %v942_v25 }
 0x107   : > { %v1058_v12 = vmul.f32 %v3095_v29, %v942_v25  ;;  %v1059_v43 = vmul.f32 %v3102_v4, %v942_v25  ;;  %v1060_v53 = vmul.f32 %v3104_v8, %v942_v25  ;;  %v1061_v0 = vmul.f32 %v3118_v23, %v942_v25 }
 0x108   : > { %v1062_v42 = vmul.f32 %v3120_v61, %v942_v25  ;;  %v1087_v3 = vmin.f32 %v959_v21, %v1055_v7  ;;  %v1088_v40 = vmin.f32 %v960_v45, %v1056_v55  ;;  %v1089_v13 = vmin.f32 %v961_v33, %v1057_v27  ;;  %v3663_v33 = vld [vmem:[#allocation44_spill] sm:$0xff]  ;;  %v3669_v55 = vld [vmem:[#allocation51_spill] sm:$0xff] }
 0x109   : > { %v1090_v30 = vmin.f32 %v962_v52, %v1058_v12  ;;  %v1091_v11 = vmin.f32 %v963_v58, %v1059_v43  ;;  %v1092_v56 = vmin.f32 %v964_v24, %v1060_v53  ;;  %v1093_v48 = vmin.f32 %v965_v59, %v1061_v0  ;;  %v947_v58 = vpop.permute.xlu0 %946  ;;  %v3664_v52 = vld [vmem:[#allocation45_spill] sm:$0xff] }
 0x10a   : > { %v1094_v51 = vmin.f32 %v966_v49, %v1062_v42  ;;  %v1119_v39 = vsub.f32 0.0, %v1087_v3  ;;  %v1120_v50 = vsub.f32 0.0, %v1088_v40  ;;  %v1121_v18 = vsub.f32 0.0, %v1089_v13  ;;  %v3671_v3 = vld [vmem:[#allocation94_spill] sm:$0xff] }
 0x10b   : > { %v1122_v29 = vsub.f32 0.0, %v1090_v30  ;;  %v1123_v10 = vsub.f32 0.0, %v1091_v11  ;;  %v1124_v4 = vsub.f32 0.0, %v1092_v56  ;;  %v1125_v17 = vsub.f32 0.0, %v1093_v48  ;;  %v3672_v30 = vld [vmem:[#allocation98_spill] sm:$0xff] }
 0x10c   : > { %v1126_v8 = vsub.f32 0.0, %v1094_v51  ;;  %v1183_v23 = vadd.f32 %v3027_v2, %v1119_v39  ;;  %v1184_v61 = vadd.f32 %v3030_v15, %v1120_v50  ;;  %v1185_v25 = vadd.f32 %v3042_v26, %v1121_v18  ;;  %v3665_v2 = vld [vmem:[#allocation46_spill] sm:$0xff]  ;;  %v3666_v15 = vld [vmem:[#allocation47_spill] sm:$0xff]  ;;  %v3667_v26 = vld [vmem:[#allocation48_spill] sm:$0xff] }
 0x10d   : > { %v1186_v21 = vadd.f32 %v3056_v37, %v1122_v29  ;;  %v1187_v24 = vadd.f32 %v3062_v5, %v1123_v10  ;;  %v1188_v45 = vadd.f32 %v3068_v57, %v1124_v4  ;;  %v1189_v13 = vadd.f32 %v3075_v9, %v1125_v17  ;;  %v3668_v37 = vld [vmem:[#allocation49_spill] sm:$0xff]  ;;  %v3673_v51 = vld [vmem:[#allocation99_spill] sm:$0xff] }
 0x10e   : > { %v1190_v11 = vadd.f32 %v3081_v34, %v1126_v8  ;;  %v1219_v48 = vmul.f32 %v1183_v23, %v3663_v33  ;;  %v1220_v59 = vmul.f32 %v1184_v61, %v3664_v52  ;;  %v1221_v39 = vmul.f32 %v1185_v25, %v3665_v2  ;;  %v3670_v10 = vld [vmem:[#allocation53_spill] sm:$0xff]  ;;  %v3678_v61 = vld [vmem:[#allocation104_spill] sm:$0xff] }
 0x10f   : > { %v1222_v49 = vmul.f32 %v1186_v21, %v3666_v15  ;;  %v1223_v18 = vmul.f32 %v1187_v24, %v3667_v26  ;;  %v1224_v7 = vmul.f32 %v1188_v45, %v3668_v37  ;;  %v1225_v5 = vmul.f32 %v1189_v13, %v3669_v55  ;;  %v3679_v25 = vld [vmem:[#allocation105_spill] sm:$0xff] }
 0x110   : > { %v1226_v57 = vmul.f32 %v1190_v11, %v3670_v10  ;;  %v1251_v27 = vadd.f32 %v1220_v59, %v1219_v48  ;;  %v967_v9 = vmul.f32 %v2967_v1, %v947_v58  ;;  %v968_v34 = vmul.f32 %v2971_v60, %v947_v58  ;;  %v3674_v1 = vld [vmem:[#allocation100_spill] sm:$0xff]  ;;  %v3675_v60 = vld [vmem:[#allocation101_spill] sm:$0xff] }
 0x111   : > { %v969_v17 = vmul.f32 %v2977_v31, %v947_v58  ;;  %v970_v12 = vmul.f32 %v2981_v62, %v947_v58  ;;  %v971_v43 = vmul.f32 %v2984_v47, %v947_v58  ;;  %v972_v53 = vmul.f32 %v2987_v22, %v947_v58  ;;  %v3676_v31 = vld [vmem:[#allocation102_spill] sm:$0xff]  ;;  %v3677_v62 = vld [vmem:[#allocation103_spill] sm:$0xff] }
 0x112   : > { %v973_v0 = vmul.f32 %v2993_v6, %v947_v58  ;;  %v1252_v42 = vadd.f32 %v1251_v27, %v1221_v39  ;;  %v974_v40 = vmul.f32 %v3671_v3, %v947_v58  ;;  %v1063_v56 = vmul.f32 %v3672_v30, %v947_v58 }
 0x113   : > { %v1064_v50 = vmul.f32 %v3673_v51, %v947_v58  ;;  %v1065_v29 = vmul.f32 %v3674_v1, %v947_v58  ;;  %v1066_v4 = vmul.f32 %v3675_v60, %v947_v58  ;;  %v1067_v8 = vmul.f32 %v3676_v31, %v947_v58  ;;  %v3686_v51 = vld [vmem:[#allocation96_spill] sm:$0xff] }
 0x114   : > { %v1068_v23 = vmul.f32 %v3677_v62, %v947_v58  ;;  %v1253_v47 = vadd.f32 %v1252_v42, %v1222_v49  ;;  %v1069_v22 = vmul.f32 %v3678_v61, %v947_v58  ;;  %v1070_v6 = vmul.f32 %v3679_v25, %v947_v58  ;;  %v3680_v42 = vld [vmem:[#allocation90_spill] sm:$0xff]  ;;  %v3693_v25 = vld [vmem:[#allocation24_spill] sm:$0xff] }
 0x115   : > { %v1095_v21 = vmin.f32 %v967_v9, %v1063_v56  ;;  %v1096_v24 = vmin.f32 %v968_v34, %v1064_v50  ;;  %v1097_v45 = vmin.f32 %v969_v17, %v1065_v29  ;;  %v1098_v13 = vmin.f32 %v970_v12, %v1066_v4  ;;  %v3681_v9 = vld [vmem:[#allocation89_spill] sm:$0xff]  ;;  %v3682_v17 = vld [vmem:[#allocation91_spill] sm:$0xff]  ;;  %v952_v56 = vpop.permute.xlu1 %951  ;;  %v3688_v29 = vld [vmem:[#allocation20_spill] sm:$0xff] }
 0x116   : > { %v1099_v11 = vmin.f32 %v971_v43, %v1067_v8  ;;  %v1254_v33 = vadd.f32 %v1253_v47, %v1223_v18  ;;  %v1100_v48 = vmin.f32 %v972_v53, %v1068_v23  ;;  %v1101_v52 = vmin.f32 %v973_v0, %v1069_v22  ;;  %v3683_v18 = vld [vmem:[#allocation92_spill] sm:$0xff]  ;;  %v3684_v0 = vld [vmem:[#allocation93_spill] sm:$0xff]  ;;  %v3690_v62 = vld [vmem:[#allocation22_spill] sm:$0xff] }
 0x117   : > { %v1102_v59 = vmin.f32 %v974_v40, %v1070_v6  ;;  %v1127_v2 = vsub.f32 0.0, %v1095_v21  ;;  %v1128_v39 = vsub.f32 0.0, %v1096_v24  ;;  %v1129_v15 = vsub.f32 0.0, %v1097_v45  ;;  %v3685_v40 = vld [vmem:[#allocation95_spill] sm:$0xff]  ;;  %v3687_v50 = vld [vmem:[#allocation97_spill] sm:$0xff] }
 0x118   : > { %v1130_v26 = vsub.f32 0.0, %v1098_v13  ;;  %v1255_v37 = vadd.f32 %v1254_v33, %v1224_v7  ;;  %v1131_v55 = vsub.f32 0.0, %v1099_v11  ;;  %v1132_v49 = vsub.f32 0.0, %v1100_v48  ;;  %v3689_v4 = vld [vmem:[#allocation21_spill] sm:$0xff]  ;;  %v3691_v47 = vld [vmem:[#allocation23_spill] sm:$0xff] }
 0x119   : > { %v1133_v10 = vsub.f32 0.0, %v1101_v52  ;;  %v1134_v27 = vsub.f32 0.0, %v1102_v59  ;;  %v1191_v58 = vadd.f32 %v3680_v42, %v1127_v2  ;;  %v1192_v34 = vadd.f32 %v3681_v9, %v1128_v39  ;;  %v3694_v21 = vld [vmem:[#allocation25_spill] sm:$0xff]  ;;  %v3695_v45 = vld [vmem:[#allocation39_spill] sm:$0xff]  ;;  %v3697_v52 = vld [vmem:[#allocation84_spill] sm:$0xff] }
 0x11a   : > { %v1193_v12 = vadd.f32 %v3682_v17, %v1129_v15  ;;  %v1256_v43 = vadd.f32 %v1255_v37, %v1225_v5  ;;  %v1194_v53 = vadd.f32 %v3683_v18, %v1130_v26  ;;  %v1195_v3 = vadd.f32 %v3684_v0, %v1131_v55  ;;  %v3696_v33 = vld [vmem:[#allocation83_spill] sm:$0xff]  ;;  %v3698_v59 = vld [vmem:[#allocation85_spill] sm:$0xff]  ;;  %v3699_v39 = vld [vmem:[#allocation86_spill] sm:$0xff] }
 0x11b   : > { %v1196_v30 = vadd.f32 %v3685_v40, %v1132_v49  ;;  %v1197_v7 = vadd.f32 %v3686_v51, %v1133_v10  ;;  %v1198_v1 = vadd.f32 %v3687_v50, %v1134_v27  ;;  %v1227_v60 = vmul.f32 %v1191_v58, %v3688_v29  ;;  %v3700_v37 = vld [vmem:[#allocation87_spill] sm:$0xff]  ;;  %v3701_v49 = vld [vmem:[#allocation88_spill] sm:$0xff]  ;;  %v3702_v27 = vld [vmem:[#allocation106_spill] sm:$0xff] }
 0x11c   : > { %v1228_v31 = vmul.f32 %v1192_v34, %v3689_v4  ;;  %v1257_v8 = vadd.f32 %v1256_v43, %v1226_v57  ;;  %v1229_v23 = vmul.f32 %v1193_v12, %v3690_v62  ;;  %v1230_v5 = vmul.f32 %v1194_v53, %v3691_v47  ;;  %v3703_v58 = vld [vmem:[#allocation82_spill] sm:$0xff]  ;;  %v3704_v18 = vld [vmem:[#allocation69_spill] sm:$0xff]  ;;  %v3706_v40 = vld [vmem:[#allocation72_spill] sm:$0xff] }
 0x11d   : > { %v3692_v61 = vmax.f32 %v3660_v14, 0.8  ;;  %v1231_v6 = vmul.f32 %v1195_v3, %v3693_v25  ;;  %v1232_v24 = vmul.f32 %v1196_v30, %v3694_v21  ;;  %v1233_v13 = vmul.f32 %v1197_v7, %v3695_v45  ;;  %v3705_v0 = vld [vmem:[#allocation70_spill] sm:$0xff]  ;;  %v3707_v51 = vld [vmem:[#allocation75_spill] sm:$0xff]  ;;  %v3708_v50 = vld [vmem:[#allocation76_spill] sm:$0xff] }
 0x11e   : > { %v1260_v11 = vadd.f32 %v1228_v31, %v1227_v60  ;;  %1258 = vadd.xlane.f32.xlu0 %v1257_v8  ;;  %v975_v48 = vmul.f32 %v3696_v33, %v952_v56  ;;  %v976_v57 = vmul.f32 %v3697_v52, %v952_v56  ;;  %v977_v2 = vmul.f32 %v3698_v59, %v952_v56  ;;  %v3709_v45 = vld [vmem:[#allocation42_spill] sm:$0xff] }
 0x11f   : > { %v3278_v22 = vmin.f32 %v3692_v61, 1.2  ;;  %v978_v15 = vmul.f32 %v3699_v39, %v952_v56  ;;  %v979_v55 = vmul.f32 %v3700_v37, %v952_v56  ;;  %v980_v10 = vmul.f32 %v3701_v49, %v952_v56  ;;  %v3712_v39 = vld [vmem:[#allocation108_spill] sm:$0xff]  ;;  %v3713_v37 = vld [vmem:[#allocation50_spill] sm:$0xff] }
 0x120   : > { %v1261_v26 = vadd.f32 %v1260_v11, %v1229_v23  ;;  %v981_v42 = vmul.f32 %v3702_v27, %v952_v56  ;;  %v982_v9 = vmul.f32 %v3703_v58, %v952_v56  ;;  %v1071_v34 = vmul.f32 %v3124_v38, %v952_v56  ;;  %v3716_v58 = vld [vmem:[#allocation56_spill] sm:$0xff] }
 0x121   : > { %v1072_v17 = vmul.f32 %v3126_v44, %v952_v56  ;;  %v1073_v12 = vmul.f32 %v3128_v63, %v952_v56  ;;  %v1074_v53 = vmul.f32 %v3704_v18, %v952_v56  ;;  %v1075_v3 = vmul.f32 %v3705_v0, %v952_v56 }
 0x122   : > { %v1262_v43 = vadd.f32 %v1261_v26, %v1230_v5  ;;  %v1076_v30 = vmul.f32 %v3706_v40, %v952_v56  ;;  %v1077_v7 = vmul.f32 %v3707_v51, %v952_v56  ;;  %v1078_v29 = vmul.f32 %v3708_v50, %v952_v56  ;;  %v3722_v51 = vld [vmem:[#allocation52_spill] sm:$0xff] }
 0x123   : > { %v1103_v60 = vmin.f32 %v975_v48, %v1071_v34  ;;  %v1104_v4 = vmin.f32 %v976_v57, %v1072_v17  ;;  %v1105_v8 = vmin.f32 %v977_v2, %v1073_v12  ;;  %v1106_v38 = vmin.f32 %v978_v15, %v1074_v53  ;;  %v3710_v48 = vld [vmem:[#allocation79_spill] sm:$0xff]  ;;  %v3717_v34 = vld [vmem:[#allocation57_spill] sm:$0xff]  ;;  %v3718_v12 = vld [vmem:[#allocation58_spill] sm:$0xff] }
 0x124   : > { %v1263_v31 = vadd.f32 %v1262_v43, %v1231_v6  ;;  %v1107_v62 = vmin.f32 %v979_v55, %v1075_v3  ;;  %v1108_v44 = vmin.f32 %v980_v10, %v1076_v30  ;;  %v1109_v23 = vmin.f32 %v981_v42, %v1077_v7  ;;  %v3711_v6 = vld [vmem:[#allocation107_spill] sm:$0xff]  ;;  %v3715_v42 = vld [vmem:[#allocation109_spill] sm:$0xff]  ;;  %v3723_v50 = vld [vmem:[#allocation60_spill] sm:$0xff] }
 0x125   : > { %v1110_v63 = vmin.f32 %v982_v9, %v1078_v29  ;;  %v1135_v47 = vsub.f32 0.0, %v1103_v60  ;;  %v1136_v61 = vsub.f32 0.0, %v1104_v4  ;;  %v1137_v25 = vsub.f32 0.0, %v1105_v8  ;;  %v3720_v3 = vld [vmem:[#allocation73_spill] sm:$0xff]  ;;  %v3724_v4 = vld [vmem:[#allocation54_spill] sm:$0xff]  ;;  %v3725_v8 = vld [vmem:[#allocation68_spill] sm:$0xff] }
 0x126   : > { %v1264_v5 = vadd.f32 %v1263_v31, %v1232_v24  ;;  %v1138_v21 = vsub.f32 0.0, %v1106_v38  ;;  %v1234_v11 = vmul.f32 %v1198_v1, %v3709_v45  ;;  %v1139_v33 = vsub.f32 0.0, %v1107_v62  ;;  %v957_v1 = vpop.permute.xlu1 %956  ;;  %v3726_v62 = vld [vmem:[#allocation71_spill] sm:$0xff] }
 0x127   : > { %v1140_v52 = vsub.f32 0.0, %v1108_v44  ;;  %v1141_v59 = vsub.f32 0.0, %v1109_v23  ;;  %v1199_v57 = vadd.f32 %v3710_v48, %v1135_v47  ;;  %v1200_v2 = vadd.f32 %v3711_v6, %v1136_v61  ;;  %v3727_v23 = vld [vmem:[#allocation74_spill] sm:$0xff]  ;;  %v3732_v6 = vld [vmem:[#allocation35_spill] sm:$0xff] }
 0x128   : > { %v1265_v56 = vadd.f32 %v1264_v5, %v1233_v13  ;;  %v1201_v15 = vadd.f32 %v3712_v39, %v1137_v25  ;;  %v1142_v26 = vsub.f32 0.0, %v1110_v63  ;;  %v1202_v55 = vadd.f32 %v3713_v37, %v1138_v21  ;;  %v3730_v25 = vld [vmem:[#allocation78_spill] sm:$0xff] }
 0x129   : > { %v3714_v24 = vmax.f32 %v3661_v28, 0.8  ;;  %v3308_v10 = vadd.f32 %v3206_v36, %v3183_v35  ;;  %v1203_v13 = vadd.f32 %v3715_v42, %v1139_v33  ;;  %v1235_v9 = vmul.f32 %v1199_v57, %v3716_v58  ;;  %v3721_v36 = vld [vmem:[#allocation110_spill] sm:$0xff]  ;;  %v3733_v42 = vld [vmem:[#allocation59_spill] sm:$0xff] }
 0x12a   : > { %v1266_v27 = vadd.f32 %v1265_v56, %v1234_v11  ;;  %v1236_v17 = vmul.f32 %v1200_v2, %v3717_v34  ;;  %v1237_v43 = vmul.f32 %v1201_v15, %v3718_v12  ;;  %v3719_v18 = vmax.f32 %v3110_v16, 0.8  ;;  %v3734_v58 = vld [vmem:[#allocation63_spill] sm:$0xff] }
 0x12b   : > { %v1053_v49 = vmin.f32 %v3714_v24, 1.2  ;;  %v1175_v0 = vmul.f32 0.01, %v3172_v19  ;;  %v1372_v40 = vadd.f32 %v3214_v32, %v3720_v3  ;;  %v1204_v30 = vadd.f32 %v3721_v36, %v1140_v52  ;;  %v3728_v19 = vld [vmem:[#allocation61_spill] sm:$0xff] }
 0x12c   : > { %v1054_v53 = vmin.f32 %v3719_v18, 1.2  ;;  %1267 = vadd.xlane.f32.xlu1 %v1266_v27  ;;  %v1205_v7 = vadd.f32 %v3722_v51, %v1141_v59  ;;  %v1238_v29 = vmul.f32 %v1202_v55, %v3723_v50  ;;  %v1269_v60 = vadd.f32 %v1236_v17, %v1235_v9  ;;  %v3729_v32 = vld [vmem:[#allocation77_spill] sm:$0xff]  ;;  %v3731_v59 = vld [vmem:[#allocation62_spill] sm:$0xff] }
 0x12d   : > { %v1206_v31 = vadd.f32 %v3724_v4, %v1142_v26  ;;  %v983_v38 = vmul.f32 %v3725_v8, %v957_v1  ;;  %v984_v44 = vmul.f32 %v3726_v62, %v957_v1  ;;  %v985_v63 = vmul.f32 %v3727_v23, %v957_v1  ;;  %v3735_v9 = vld [vmem:[#allocation65_spill] sm:$0xff]  ;;  %v3739_v62 = vld [vmem:[#allocation55_spill] sm:$0xff] }
 0x12e   : > { %v1239_v47 = vmul.f32 %v1203_v13, %v3728_v19  ;;  %v1270_v5 = vadd.f32 %v1269_v60, %v1237_v43  ;;  %v986_v61 = vmul.f32 %v3729_v32, %v957_v1  ;;  %v987_v21 = vmul.f32 %v3730_v25, %v957_v1  ;;  %v1297_v23 = vld [vmem:[#allocation3 + $0x8] sm:$0xff]  ;;  %v3742_v25 = vld [vmem:[#allocation27_spill] sm:$0xff] }
 0x12f   : > { %v1079_v45 = vmul.f32 %v3200_v20, %v957_v1  ;;  %v1080_v11 = vmul.f32 %v3202_v54, %v957_v1  ;;  %v1081_v33 = vmul.f32 %v3208_v41, %v957_v1  ;;  %v1082_v52 = vmul.f32 %v3210_v46, %v957_v1 }
 0x130   : > { %v1240_v56 = vmul.f32 %v1204_v30, %v3731_v59  ;;  %v1271_v48 = vadd.f32 %v1270_v5, %v1238_v29  ;;  %v988_v57 = vmul.f32 %v3660_v14, %v957_v1  ;;  %v1083_v2 = vmul.f32 %v3732_v6, %v957_v1  ;;  %1373 = vadd.xlane.f32.xlu1 %v1372_v40  ;;  %v3736_v30 = vld [vmem:[#allocation64_spill] sm:$0xff]  ;;  %v3737_v29 = vld [vmem:[#allocation66_spill] sm:$0xff]  ;;  %v3741_v5 = vld [vmem:[#allocation67_spill] sm:$0xff] }
 0x131   : > { %v1084_v39 = vmul.f32 %v3278_v22, %v957_v1  ;;  %v1111_v15 = vmin.f32 %v983_v38, %v1079_v45  ;;  %v1112_v26 = vmin.f32 %v984_v44, %v1080_v11  ;;  %v1113_v37 = vmin.f32 %v985_v63, %v1081_v33  ;;  %v3738_v38 = vld [vmem:[#allocation43_spill] sm:$0xff]  ;;  %v3740_v44 = vld [vmem:[#allocation26_spill] sm:$0xff] }
 0x132   : > { %v1272_v20 = vadd.f32 %v1271_v48, %v1239_v47  ;;  %v989_v54 = vmul.f32 %v3661_v28, %v957_v1  ;;  %v1085_v55 = vmul.f32 %v1053_v49, %v957_v1  ;;  %v1114_v41 = vmin.f32 %v986_v61, %v1082_v52  ;;  %v1317_v28 = vpop.xlane.xlu0 %1316  ;;  %v1299_v63 = vld [vmem:[#allocation3 + $0x18] sm:$0xff]  ;;  %v3743_v45 = vld [vmem:[#allocation34_spill] sm:$0xff]  ;;  %v3744_v52 = vld [vmem:[#allocation28_spill] sm:$0xff] }
 0x133   : > { %v1115_v24 = vmin.f32 %v987_v21, %v1083_v2  ;;  %v1143_v46 = vsub.f32 0.0, %v1111_v15  ;;  %v1144_v27 = vsub.f32 0.0, %v1112_v26  ;;  %v1176_v13 = vmul.f32 0.01, %v3733_v42  ;;  %v1296_v21 = vld [vmem:[#allocation3] sm:$0xff]  ;;  %v1298_v42 = vld [vmem:[#allocation3 + $0x10] sm:$0xff] }
 0x134   : > { %v1241_v14 = vmul.f32 %v1205_v7, %v3734_v58  ;;  %v1242_v34 = vmul.f32 %v1206_v31, %v3735_v9  ;;  %v1273_v17 = vadd.f32 %v1272_v20, %v1240_v56  ;;  %v1145_v12 = vsub.f32 0.0, %v1113_v37  ;;  %v3745_v20 = vld [vmem:[#allocation29_spill] sm:$0xff]  ;;  %v3747_v58 = vld [vmem:[#allocation31_spill] sm:$0xff] }
 0x135   : > { %v990_v22 = vmul.f32 %v3110_v16, %v957_v1  ;;  %v1086_v43 = vmul.f32 %v1054_v53, %v957_v1  ;;  %v1116_v18 = vmin.f32 %v988_v57, %v1084_v39  ;;  %v1177_v3 = vmul.f32 0.01, %v3183_v35 }
 0x136   : > { %v1274_v49 = vadd.f32 %v1273_v17, %v1241_v14  ;;  %v1117_v40 = vmin.f32 %v989_v54, %v1085_v55  ;;  %v1146_v36 = vsub.f32 0.0, %v1114_v41  ;;  %v1178_v51 = vmul.f32 0.01, %v3736_v30  ;;  %v1335_v19 = vpop.xlane.xlu0 %1334  ;;  %v1308_v2 = vpop.xlane.xlu1 %1307 }
 0x137   : > { %v1147_v50 = vsub.f32 0.0, %v1115_v24  ;;  %v1179_v60 = vmul.f32 0.01, %v3737_v29  ;;  %v1207_v7 = vadd.f32 %v1175_v0, %v1143_v46  ;;  %v1208_v4 = vadd.f32 %v1176_v13, %v1144_v27  ;;  %v3746_v24 = vld [vmem:[#allocation30_spill] sm:$0xff] }
 0x138   : > { %v1275_v31 = vadd.f32 %v1274_v49, %v1242_v34  ;;  %v1209_v8 = vadd.f32 %v1177_v3, %v1145_v12  ;;  %v842_v16 = vsub.f32 %v3739_v62, %v3738_v38  ;;  %v1118_v1 = vmin.f32 %v990_v22, %v1086_v43  ;;  %v3748_v22 = vld [vmem:[#allocation32_spill] sm:$0xff]  ;;  %v3749_v3 = vld [vmem:[#allocation33_spill] sm:$0xff] }
 0x139   : > { %v1148_v53 = vsub.f32 0.0, %v1116_v18  ;;  %v1243_v35 = vmul.f32 %v1207_v7, %v3740_v44  ;;  %v1149_v47 = vsub.f32 0.0, %v1117_v40  ;;  %v1180_v32 = vmul.f32 0.01, %v3741_v5  ;;  %v1216_v62 = vld [vmem:[#allocation2 + $0x8] sm:$0xff] }
 0x13a   : > { %1276 = vadd.xlane.f32.xlu0 %v1275_v31  ;;  %v1210_v61 = vadd.f32 %v1178_v51, %v1146_v36  ;;  %v1244_v0 = vmul.f32 %v1208_v4, %v3742_v25  ;;  %v1181_v11 = vmul.f32 0.01, %v3743_v45  ;;  %v1211_v33 = vadd.f32 %v1179_v60, %v1147_v50  ;;  %v1345_v51 = vld [vmem:[#allocation4 + $0x8] sm:$0xff]  ;;  %v1344_v60 = vld [vmem:[#allocation4] sm:$0xff] }
 0x13b   : > { %v1245_v59 = vmul.f32 %v1209_v8, %v3744_v52  ;;  %v1377_v56 = vadd.f32 %v3308_v10, %v3736_v30  ;;  %v1337_v57 = vadd.f32 %v1317_v28, %v1297_v23  ;;  %v1339_v6 = vadd.f32 %v1335_v19, %v1299_v63  ;;  %v1215_v31 = vld [vmem:[#allocation2] sm:$0xff]  ;;  %v1217_v23 = vld [vmem:[#allocation2 + $0x10] sm:$0xff] }
 0x13c   : > { %v1278_v48 = vadd.f32 %v1244_v0, %v1243_v35  ;;  %v1150_v39 = vsub.f32 0.0, %v1118_v1  ;;  %v1182_v15 = vmul.f32 0.01, %v842_v16  ;;  %v1336_v26 = vadd.f32 %v1308_v2, %v1296_v21  ;;  %v1326_v17 = vpop.xlane.xlu1 %1325 }
 0x13d   : > { %v1212_v37 = vadd.f32 %v1180_v32, %v1148_v53  ;;  %v1246_v54 = vmul.f32 %v1210_v61, %v3745_v20  ;;  %v1378_v41 = vadd.f32 %v1377_v56, %v3737_v29  ;;  %1341 = vst.msk [vmem:[#allocation3 + $0x8] sm:$0xff] %vm1291_vm1, %v1337_v57  ;;  %1343 = vst.msk [vmem:[#allocation3 + $0x18] sm:$0xff] %vm1291_vm1, %v1339_v6  ;;  %v1347_v61 = vld [vmem:[#allocation4 + $0x18] sm:$0xff] }
 0x13e   : > { %v1279_v55 = vadd.f32 %v1278_v48, %v1245_v59  ;;  %1340 = vst.msk [vmem:[#allocation3] sm:$0xff] %vm1291_vm1, %v1336_v26  ;;  %v1213_v10 = vadd.f32 %v1181_v11, %v1149_v47  ;;  %v1247_v46 = vmul.f32 %v1211_v33, %v3746_v24  ;;  %v1214_v13 = vadd.f32 %v1182_v15, %v1150_v39  ;;  %v1218_v47 = vld [vmem:[#allocation2 + $0x18] sm:$0xff] }
 0x13f   : > { %v1248_v14 = vmul.f32 %v1212_v37, %v3747_v58  ;;  %v1379_v34 = vadd.f32 %v1378_v41, %v3741_v5  ;;  %v1338_v12 = vadd.f32 %v1326_v17, %v1298_v42 }
 0x140   : > { %v1280_v27 = vadd.f32 %v1279_v55, %v1246_v54  ;;  %v1249_v43 = vmul.f32 %v1213_v10, %v3748_v22  ;;  %v1250_v28 = vmul.f32 %v1214_v13, %v3749_v3 }
 0x141   : > { %1342 = vst.msk [vmem:[#allocation3 + $0x10] sm:$0xff] %vm1291_vm1, %v1338_v12  ;;  %v1380_v40 = vadd.f32 %v1379_v34, %v3743_v45 }
 0x142   : > { %v1281_v9 = vadd.f32 %v1280_v27, %v1247_v46 }
 0x143   : > { %v1381_v30 = vadd.f32 %v1380_v40, %v842_v16  ;;  %v1346_v16 = vld [vmem:[#allocation4 + $0x10] sm:$0xff] }
 0x144   : > { %v1282_v18 = vadd.f32 %v1281_v9, %v1248_v14 }
 0x146   : > { %v1283_v49 = vadd.f32 %v1282_v18, %v1249_v43 }
 0x148   : > { %v1284_v36 = vadd.f32 %v1283_v49, %v1250_v28 }
 0x14a   : > { %1285 = vadd.xlane.f32.xlu0 %v1284_v36 }
 0x14e   : > { %1382 = vadd.xlane.f32.xlu0 %v1381_v30 }
 0x165   : > { %v1365_v50 = vpop.xlane.xlu0 %1364 }
 0x166   : > { %v1385_v29 = vadd.f32 %v1365_v50, %v1345_v51 }
 0x168   : > { %1389 = vst.msk [vmem:[#allocation4 + $0x8] sm:$0xff] %vm1291_vm1, %v1385_v29 }
 0x176   : > { %v1356_v7 = vpop.xlane.xlu1 %1355 }
 0x177   : > { %v1384_v4 = vadd.f32 %v1356_v7, %v1344_v60 }
 0x179   : > { %1388 = vst.msk [vmem:[#allocation4] sm:$0xff] %vm1291_vm1, %v1384_v4 }
 0x1a7   : > { %v1259_v8 = vpop.xlane.xlu0 %1258 }
 0x1a8   : > { %v1287_v38 = vadd.f32 %v1259_v8, %v1215_v31 }
 0x1aa   : > { %1292 = vst.msk [vmem:[#allocation2] sm:$0xff] %vm1291_vm1, %v1287_v38 }
 0x1b5   : > { %v1268_v1 = vpop.xlane.xlu1 %1267 }
 0x1b6   : > { %v1288_v53 = vadd.f32 %v1268_v1, %v1216_v62 }
 0x1b8   : > { %1293 = vst.msk [vmem:[#allocation2 + $0x8] sm:$0xff] %vm1291_vm1, %v1288_v53 }
 0x1b9   : > { %v1374_v44 = vpop.xlane.xlu1 %1373 }
 0x1ba   : > { %v1386_v35 = vadd.f32 %v1374_v44, %v1346_v16 }
 0x1bc   : > { %1390 = vst.msk [vmem:[#allocation4 + $0x10] sm:$0xff] %vm1291_vm1, %v1386_v35 }
 0x1c3   : > { %v1277_v63 = vpop.xlane.xlu0 %1276 }
 0x1c4   : > { %v1289_v19 = vadd.f32 %v1277_v63, %v1217_v23 }
 0x1c6   : > { %1294 = vst.msk [vmem:[#allocation2 + $0x10] sm:$0xff] %vm1291_vm1, %v1289_v19 }
 0x1d3   : > { %v1286_v5 = vpop.xlane.xlu0 %1285 }
 0x1d4   : > { %v1290_v32 = vadd.f32 %v1286_v5, %v1218_v47 }
 0x1d6   : > { %1295 = vst.msk [vmem:[#allocation2 + $0x18] sm:$0xff] %vm1291_vm1, %v1290_v32  ;;  %1395 = sbr.rel (%p1694_p12) target bundleno = 496 (0x1f0), region = 64 }
 0x1d7   : > { %v1383_v25 = vpop.xlane.xlu0 %1382 }
 0x1d8   : > { %v1387_v0 = vadd.f32 %v1383_v25, %v1347_v61 }
 0x1da   : > { %1391 = vst.msk [vmem:[#allocation4 + $0x18] sm:$0xff] %vm1291_vm1, %v1387_v0 }
 0x1db   : > { %v1400_v21 = vld [vmem:[#allocation3] sm:$0xff]  ;;  %v1401_v11 = vld [vmem:[#allocation3 + $0x8] sm:$0xff]  ;;  %v1402_v52 = vld [vmem:[#allocation3 + $0x10] sm:$0xff] }
 0x1dc   : > { %v1416_v45 = vld [vmem:[#allocation4] sm:$0xff]  ;;  %1921 = vrcp.f32 %v1400_v21  ;;  %v1417_v33 = vld [vmem:[#allocation4 + $0x8] sm:$0xff]  ;;  %v1418_v59 = vld [vmem:[#allocation4 + $0x10] sm:$0xff] }
 0x1dd   : > { %1420 = vst.msk [vmem:[%s2355_s11] sm:$0xff] %vm1291_vm1, %v1416_v45  ;;  %1923 = vrcp.f32 %v1401_v11  ;;  %1421 = vst.msk [vmem:[%s2355_s11 + $0x8] sm:$0xff] %vm1291_vm1, %v1417_v33  ;;  %v1403_v56 = vld [vmem:[#allocation3 + $0x18] sm:$0xff]  ;;  %v1396_v57 = vld [vmem:[#allocation2] sm:$0xff] }
 0x1de   : > { %1925 = vrcp.f32 %v1402_v52  ;;  %1422 = vst.msk [vmem:[%s2355_s11 + $0x10] sm:$0xff] %vm1291_vm1, %v1418_v59  ;;  %v1397_v6 = vld [vmem:[#allocation2 + $0x8] sm:$0xff]  ;;  %v1398_v39 = vld [vmem:[#allocation2 + $0x10] sm:$0xff]  ;;  %v1399_v37 = vld [vmem:[#allocation2 + $0x18] sm:$0xff] }
 0x1df   : > { %1927 = vrcp.f32 %v1403_v56 }
 0x1e1   : > { %v1419_v48 = vld [vmem:[#allocation4 + $0x18] sm:$0xff] }
 0x1e2   : > { %1423 = vst.msk [vmem:[%s2355_s11 + $0x18] sm:$0xff] %vm1291_vm1, %v1419_v48 }
 0x1e9   : > { %v1922_v2 = vpop.eup %1921 }
 0x1ea   : > { %v1924_v15 = vpop.eup %1923  ;;  %v1405_v26 = vmul.f32 %v1922_v2, %v1396_v57 }
 0x1eb   : > { %v1926_v20 = vpop.eup %1925  ;;  %v1407_v54 = vmul.f32 %v1924_v15, %v1397_v6 }
 0x1ec   : > { %v1928_v55 = vpop.eup %1927  ;;  %1412 = vst.msk [vmem:[%s2350_s17] sm:$0xff] %vm1291_vm1, %v1405_v26  ;;  %v1409_v41 = vmul.f32 %v1926_v20, %v1398_v39 }
 0x1ed   : > { %1413 = vst.msk [vmem:[%s2350_s17 + $0x8] sm:$0xff] %vm1291_vm1, %v1407_v54  ;;  %v1411_v10 = vmul.f32 %v1928_v55, %v1399_v37 }
 0x1ee   : > { %1414 = vst.msk [vmem:[%s2350_s17 + $0x10] sm:$0xff] %vm1291_vm1, %v1409_v41 }
 0x1ef   : > { %1415 = vst.msk [vmem:[%s2350_s17 + $0x18] sm:$0xff] %vm1291_vm1, %v1411_v10 }
 0x1f0 PF: > { %s26_s28 = sadd.s32 1, %s2115_s28   ;;  %s3751_s29 = sld [smem:[#allocation15_spill]] }
 0x1f1   : > { %p23_p8 = scmp.ge.s32.totalorder %s26_s28, 6   ;;  %s3752_s23 = sld [smem:[#allocation19_spill]] }
 0x1f2   : > { %s3753_s0 = sld [smem:[#allocation17_spill]]  ;;  %s3755_s21 = smov %s2091_s22 }
 0x1f3   : > { %s3754_s20 = sld [smem:[#allocation18_spill]]  ;;  %s3757_s24 = smov %s2107_s26 }
 0x1f4   : > { %s3758_s25 = smov %s2111_s27 }
 0x1f5   :  { %25 = sbr.rel (!%p23_p8) target bundleno = 13 (0xd), region = 140 }
 0x1f6   : > { %s3756_s22 = smov %s3751_s29 }
 0x1f8   : > { %s3759_s26 = smov %s3753_s0 }
 0x1f9   : > { %s3760_s27 = smov %s3754_s20 }
 0x1fa   :  { %1463 = vsyncpa [#allocation6], 1 }
 0x1fb   :  { %1465 = vsyncpa [#allocation6 + $0x1], 1 }
 0x1fc   :  { %1466 = vsyncpa [#allocation8], 1 }
 0x1fd   :  { %1468 = vsyncpa [#allocation8 + $0x1], 1 }
 0x1fe   :  { %1469 = vsyncpa [#allocation11], 1 }
 0x1ff   :  { %1471 = vsyncpa [#allocation11 + $0x1], 1 }

</bundles_post_ra>
